<compile_context>
chip_gen: v5e
topology: v5e:2x2
jax: 0.10.0
libtpu: 0.0.40
codegen_flags: <defaults>
</compile_context>

<pallas_src>
import functools
import math

import jax
import jax.numpy as jnp
from jax.experimental import pallas as pl
from jax.experimental.pallas import tpu as pltpu


def _round_up(n, m):
    return (n + m - 1) // m * m


def _pad2(w, rows, cols):
    return jnp.pad(w, ((0, rows - w.shape[0]), (0, cols - w.shape[1])))


def _pad_bias(b, cols):
    b = b.reshape(1, -1)
    return jnp.pad(b, ((0, 0), (0, cols - b.shape[1])))


def _vmem_limit_bytes(resident_bytes, per_layer_weight_bytes):
    # resident carry/input + double-buffered per-layer weights, with headroom;
    # capped below v7x's 64 MiB physical VMEM.
    need = resident_bytes + 2 * per_layer_weight_bytes
    return int(min(max(2 * need, 8 * 1024 * 1024), 48 * 1024 * 1024))


def fused_encoder_kernel(x_ref, wqkv_ref, bqkv_ref, wo_ref, bo_ref,
                         w1_ref, b1_ref, w2_ref, b2_ref, out_ref,
                         *, batch, seq, num_heads, hidden, hidden_pad):
    layer = pl.program_id(0)
    H, Hp = hidden, hidden_pad
    d_head = H // num_heads

    # Layer 0: seed the resident activation carry (out_ref block index is constant
    # across the layer axis, so it stays in VMEM and doubles as the carry buffer).
    @pl.when(layer == 0)
    def _():
        out_ref[...] = x_ref[...]

    x = out_ref[...]                                   # (B*S, Hp) f32 carry
    xb = x.astype(jnp.bfloat16)

    # ---- fused QKV projection: one MXU matmul, N = 3*Hp (scale folded into wq) ----
    qkv = (jnp.dot(xb, wqkv_ref[...], preferred_element_type=jnp.float32)
           + bqkv_ref[...]).astype(jnp.bfloat16)       # (B*S, 3*Hp) bf16

    def heads(col0):
        # (B*S, 3*Hp) -> (B*num_heads, S, d_head) with g = b*num_heads + h.
        # num_heads lane slices + one stack, then batch regrouping via
        # sublane-tile-aligned (S multiple of 8) slices + one concat.
        per_head = jnp.stack(
            [qkv[:, col0 + h * d_head: col0 + (h + 1) * d_head]
             for h in range(num_heads)], axis=0)       # (nh, B*S, dh)
        return jnp.concatenate(
            [per_head[:, b * seq:(b + 1) * seq, :] for b in range(batch)],
            axis=0)                                    # (B*nh, S, dh)

    q3 = heads(0)                                      # scale already in wq/bq
    k3 = heads(Hp)
    v3 = heads(2 * Hp)

    # ---- attention: head-and-batch batched einsums, f32 softmax ----
    # TODO(synk): attention_mask=None path only; use a KV-tiled online softmax for large S.
    s = jnp.einsum('gqd,gkd->gqk', q3, k3,
                   preferred_element_type=jnp.float32)           # (G, S, S) f32
    s = s - jnp.max(s, axis=-1, keepdims=True)
    p = jnp.exp(s)
    p = p * pl.reciprocal(jnp.sum(p, axis=-1, keepdims=True), approx=True)

    ctx3 = jnp.einsum('gqk,gkd->gqd', p.astype(jnp.bfloat16), v3,
                      preferred_element_type=jnp.float32).astype(jnp.bfloat16)

    # Merge heads back: rows in (b, s) order, head h -> lane block h.
    ctx = jnp.concatenate(
        [jnp.concatenate([ctx3[b * num_heads + h] for h in range(num_heads)],
                         axis=-1)
         for b in range(batch)], axis=0)               # (B*S, H) bf16

    attn = (jnp.dot(ctx, wo_ref[...], preferred_element_type=jnp.float32)
            + bo_ref[...])                             # (B*S, Hp) f32

    # ---- feed forward: Linear -> GELU -> Linear ----
    h1 = (jnp.dot(attn.astype(jnp.bfloat16), w1_ref[...],
                  preferred_element_type=jnp.float32) + b1_ref[...])
    # TODO(synk): tanh-approx GELU; torch nn.GELU() default is exact erf.
    h1 = jax.nn.gelu(h1, approximate=True)
    y = (jnp.dot(h1.astype(jnp.bfloat16), w2_ref[...],
                 preferred_element_type=jnp.float32) + b2_ref[...])

    # Carry to the next layer; the last layer's write is the HBM output.
    out_ref[...] = y


def transformer_encoder(hidden_states, layer_params, num_heads):
    B, S, H = hidden_states.shape
    L = len(layer_params)
    BS = B * S
    assert H % num_heads == 0
    d_head = H // num_heads

    LANE = 128                     # pad matmul K/N dims to lane multiples
    Hp = _round_up(H, LANE)
    I = layer_params[0]["w1"].shape[-1]
    Ip = _round_up(I, LANE)
    scale = 1.0 / math.sqrt(d_head)

    # ---- host-side parameter stacking (all free): fuse QKV, fold scale, pad, bf16 ----
    wqkv, bqkv, wo, bo, w1, b1, w2, b2 = ([] for _ in range(8))
    for p in layer_params:
        wqkv.append(jnp.concatenate(
            [_pad2(p["wq"] * scale, Hp, Hp), _pad2(p["wk"], Hp, Hp),
             _pad2(p["wv"], Hp, Hp)], axis=1))                      # (Hp, 3Hp)
        bqkv.append(jnp.concatenate(
            [_pad_bias(p["bq"] * scale, Hp), _pad_bias(p["bk"], Hp),
             _pad_bias(p["bv"], Hp)], axis=1))                      # (1, 3Hp)
        wo.append(_pad2(p["wo"], H, Hp))                            # (H, Hp) -- ctx is unpadded
        bo.append(_pad_bias(p["bo"], Hp))
        w1.append(_pad2(p["w1"], Hp, Ip))
        b1.append(_pad_bias(p["b1"], Ip))
        w2.append(_pad2(p["w2"], Ip, Hp))
        b2.append(_pad_bias(p["b2"], Hp))

    def stack_w(ws):
        return jnp.stack(ws, axis=0).astype(jnp.bfloat16)           # (L, in, out)

    def stack_b(bs):
        return jnp.stack(bs, axis=0).astype(jnp.float32)            # (L, 1, out)

    params = [stack_w(wqkv), stack_b(bqkv), stack_w(wo), stack_b(bo),
              stack_w(w1), stack_b(b1), stack_w(w2), stack_b(b2)]

    x2 = jnp.pad(hidden_states.reshape(BS, H).astype(jnp.float32),
                 ((0, 0), (0, Hp - H)))                              # (BS, Hp)

    # x: constant block -> resident; weights: layer-indexed, squeezed leading dim.
    in_specs = [pl.BlockSpec((BS, Hp), lambda l: (0, 0))]
    for a in params:
        in_specs.append(pl.BlockSpec((None,) + a.shape[1:], lambda l: (l, 0, 0)))

    kernel = functools.partial(fused_encoder_kernel, batch=B, seq=S,
                               num_heads=num_heads, hidden=H, hidden_pad=Hp)

    resident_bytes = 2 * BS * Hp * 4                                 # x + out carry (f32)
    per_layer_w_bytes = sum(int(a.size) * a.dtype.itemsize for a in params) // L

    out2 = pl.pallas_call(
        kernel,
        out_shape=jax.ShapeDtypeStruct((BS, Hp), jnp.float32),
        grid_spec=pltpu.PrefetchScalarGridSpec(
            num_scalar_prefetch=0,
            grid=(L,),                                   # layers stream sequentially
            in_specs=in_specs,
            out_specs=pl.BlockSpec((BS, Hp), lambda l: (0, 0)),
        ),
        compiler_params=pltpu.CompilerParams(
            dimension_semantics=("arbitrary",),
            vmem_limit_bytes=_vmem_limit_bytes(resident_bytes, per_layer_w_bytes)),
    )(x2, *params)

    return out2[:, :H].reshape(B, S, H).astype(hidden_states.dtype)


def init_layer_params(key, hidden_size, intermediate_size):
    ks = jax.random.split(key, 6)
    std = 0.02
    H, I = hidden_size, intermediate_size
    return {
        "wq": std * jax.random.normal(ks[0], (H, H), jnp.float32),
        "bq": jnp.zeros((1, H), jnp.float32),
        "wk": std * jax.random.normal(ks[1], (H, H), jnp.float32),
        "bk": jnp.zeros((1, H), jnp.float32),
        "wv": std * jax.random.normal(ks[2], (H, H), jnp.float32),
        "bv": jnp.zeros((1, H), jnp.float32),
        "wo": std * jax.random.normal(ks[3], (H, H), jnp.float32),
        "bo": jnp.zeros((1, H), jnp.float32),
        "w1": std * jax.random.normal(ks[4], (H, I), jnp.float32),
        "b1": jnp.zeros((1, I), jnp.float32),
        "w2": std * jax.random.normal(ks[5], (I, H), jnp.float32),
        "b2": jnp.zeros((1, H), jnp.float32),
    }


if __name__ == "__main__":
    # Config (small): hidden_size=32, num_attention_heads=4, intermediate=64, num_hidden_layers=2
    B, S, H = 2, 8, 32
    NUM_HEADS = 4
    INTERMEDIATE = 64
    NUM_LAYERS = 2

    key = jax.random.PRNGKey(0)
    k_x, k_p = jax.random.split(key)
    hidden_states = jax.random.normal(k_x, (B, S, H), jnp.float32)

    layer_params = [
        init_layer_params(jax.random.fold_in(k_p, layer_idx), H, INTERMEDIATE)
        for layer_idx in range(NUM_LAYERS)
    ]

    out = transformer_encoder(hidden_states, layer_params, NUM_HEADS)
    out = jax.block_until_ready(out)
    assert out.shape == (B, S, H) and out.dtype == jnp.float32
    assert bool(jnp.all(jnp.isfinite(out)))
    print("KERNEL_OK")
</pallas_src>

<mosaic_0001>
module attributes {stable_mosaic.version = 11 : i64} {
  func.func @fused_encoder_kernel(%arg0: i32, %arg1: memref<16x128xf32, #tpu.memory_space<vmem>>, %arg2: memref<1x128x384xbf16, #tpu.memory_space<vmem>>, %arg3: memref<1x1x384xf32, #tpu.memory_space<vmem>>, %arg4: memref<1x32x128xbf16, #tpu.memory_space<vmem>>, %arg5: memref<1x1x128xf32, #tpu.memory_space<vmem>>, %arg6: memref<1x128x128xbf16, #tpu.memory_space<vmem>>, %arg7: memref<1x1x128xf32, #tpu.memory_space<vmem>>, %arg8: memref<1x128x128xbf16, #tpu.memory_space<vmem>>, %arg9: memref<1x1x128xf32, #tpu.memory_space<vmem>>, %arg10: memref<16x128xf32, #tpu.memory_space<vmem>>) attributes {dimension_semantics = [#tpu.dimension_semantics<arbitrary>], iteration_bounds = array<i64: 2>, scalar_prefetch = 0 : i64, scratch_operands = 0 : i64, tpu.core_type = #tpu.core_type<tc>, window_params = [{pipeline_mode = #tpu.pipeline_mode<synchronous>, transform_indices = @transform_0, window_bounds = array<i64: 16, 128>}, {transform_indices = @transform_1, window_bounds = array<i64: 1, 128, 384>}, {transform_indices = @transform_2, window_bounds = array<i64: 1, 1, 384>}, {transform_indices = @transform_3, window_bounds = array<i64: 1, 32, 128>}, {transform_indices = @transform_4, window_bounds = array<i64: 1, 1, 128>}, {transform_indices = @transform_5, window_bounds = array<i64: 1, 128, 128>}, {transform_indices = @transform_6, window_bounds = array<i64: 1, 1, 128>}, {transform_indices = @transform_7, window_bounds = array<i64: 1, 128, 128>}, {transform_indices = @transform_8, window_bounds = array<i64: 1, 1, 128>}, {pipeline_mode = #tpu.pipeline_mode<synchronous>, transform_indices = @transform_9, window_bounds = array<i64: 16, 128>}]} {
    %c0_i32 = arith.constant 0 : i32
    %0 = arith.cmpi eq, %arg0, %c0_i32 : i32
    %1 = arith.extui %0 : i1 to i32
    %c0_i32_0 = arith.constant 0 : i32
    %2 = arith.cmpi ne, %1, %c0_i32_0 : i32
    scf.if %2 {
      %c0_39 = arith.constant 0 : index
      %c0_40 = arith.constant 0 : index
      %119 = vector.load %arg1[%c0_39, %c0_40] : memref<16x128xf32, #tpu.memory_space<vmem>>, vector<16x128xf32>
      %c0_41 = arith.constant 0 : index
      %c0_42 = arith.constant 0 : index
      %120 = vector.load %arg10[%c0_41, %c0_42] : memref<16x128xf32, #tpu.memory_space<vmem>>, vector<16x128xf32>
      tpu.vector_store %arg10[%c0_41, %c0_42], %119 {strides = array<i32>} : memref<16x128xf32, #tpu.memory_space<vmem>>, vector<16x128xf32>,
    } else {
    }
    %c0 = arith.constant 0 : index
    %c0_1 = arith.constant 0 : index
    %3 = vector.load %arg10[%c0, %c0_1] : memref<16x128xf32, #tpu.memory_space<vmem>>, vector<16x128xf32>
    %4 = arith.truncf %3 : vector<16x128xf32> to vector<16x128xbf16>
    %c0_2 = arith.constant 0 : index
    %c0_3 = arith.constant 0 : index
    %c0_4 = arith.constant 0 : index
    %5 = vector.load %arg2[%c0_2, %c0_3, %c0_4] : memref<1x128x384xbf16, #tpu.memory_space<vmem>>, vector<1x128x384xbf16>
    %6 = vector.shape_cast %5 : vector<1x128x384xbf16> to vector<128x384xbf16>
    %cst = arith.constant dense<0.000000e+00> : vector<16x384xf32>
    %7 = tpu.matmul %4, %6, %cst {dimension_numbers = #tpu.dot_dimension_numbers<[1], [0], [0], [1], [0, 0, 1, 1], [], []>} : vector<16x128xbf16>, vector<128x384xbf16>, vector<16x384xf32> -> vector<16x384xf32>
    %c0_5 = arith.constant 0 : index
    %c0_6 = arith.constant 0 : index
    %c0_7 = arith.constant 0 : index
    %8 = vector.load %arg3[%c0_5, %c0_6, %c0_7] : memref<1x1x384xf32, #tpu.memory_space<vmem>>, vector<1x1x384xf32>
    %9 = vector.shape_cast %8 : vector<1x1x384xf32> to vector<1x384xf32>
    %10 = vector.broadcast %9 : vector<1x384xf32> to vector<16x384xf32>
    %11 = arith.addf %7, %10 : vector<16x384xf32>
    %12 = arith.truncf %11 : vector<16x384xf32> to vector<16x384xbf16>
    %13 = vector.extract_strided_slice %12 {offsets = [0, 0], sizes = [16, 8], strides = [1, 1]} : vector<16x384xbf16> to vector<16x8xbf16>
    %14 = vector.extract_strided_slice %12 {offsets = [0, 8], sizes = [16, 8], strides = [1, 1]} : vector<16x384xbf16> to vector<16x8xbf16>
    %15 = vector.extract_strided_slice %12 {offsets = [0, 16], sizes = [16, 8], strides = [1, 1]} : vector<16x384xbf16> to vector<16x8xbf16>
    %16 = vector.extract_strided_slice %12 {offsets = [0, 24], sizes = [16, 8], strides = [1, 1]} : vector<16x384xbf16> to vector<16x8xbf16>
    %17 = vector.shape_cast %13 : vector<16x8xbf16> to vector<1x16x8xbf16>
    %18 = vector.shape_cast %14 : vector<16x8xbf16> to vector<1x16x8xbf16>
    %19 = vector.shape_cast %15 : vector<16x8xbf16> to vector<1x16x8xbf16>
    %20 = vector.shape_cast %16 : vector<16x8xbf16> to vector<1x16x8xbf16>
    %21 = tpu.concatenate %17, %18, %19, %20 in 0 : vector<1x16x8xbf16>, vector<1x16x8xbf16>, vector<1x16x8xbf16>, vector<1x16x8xbf16> -> vector<4x16x8xbf16>
    %22 = vector.extract_strided_slice %21 {offsets = [0, 0, 0], sizes = [4, 8, 8], strides = [1, 1, 1]} : vector<4x16x8xbf16> to vector<4x8x8xbf16>
    %23 = vector.extract_strided_slice %21 {offsets = [0, 8, 0], sizes = [4, 8, 8], strides = [1, 1, 1]} : vector<4x16x8xbf16> to vector<4x8x8xbf16>
    %24 = tpu.concatenate %22, %23 in 0 : vector<4x8x8xbf16>, vector<4x8x8xbf16> -> vector<8x8x8xbf16>
    %25 = vector.extract_strided_slice %12 {offsets = [0, 128], sizes = [16, 8], strides = [1, 1]} : vector<16x384xbf16> to vector<16x8xbf16>
    %26 = vector.extract_strided_slice %12 {offsets = [0, 136], sizes = [16, 8], strides = [1, 1]} : vector<16x384xbf16> to vector<16x8xbf16>
    %27 = vector.extract_strided_slice %12 {offsets = [0, 144], sizes = [16, 8], strides = [1, 1]} : vector<16x384xbf16> to vector<16x8xbf16>
    %28 = vector.extract_strided_slice %12 {offsets = [0, 152], sizes = [16, 8], strides = [1, 1]} : vector<16x384xbf16> to vector<16x8xbf16>
    %29 = vector.shape_cast %25 : vector<16x8xbf16> to vector<1x16x8xbf16>
    %30 = vector.shape_cast %26 : vector<16x8xbf16> to vector<1x16x8xbf16>
    %31 = vector.shape_cast %27 : vector<16x8xbf16> to vector<1x16x8xbf16>
    %32 = vector.shape_cast %28 : vector<16x8xbf16> to vector<1x16x8xbf16>
    %33 = tpu.concatenate %29, %30, %31, %32 in 0 : vector<1x16x8xbf16>, vector<1x16x8xbf16>, vector<1x16x8xbf16>, vector<1x16x8xbf16> -> vector<4x16x8xbf16>
    %34 = vector.extract_strided_slice %33 {offsets = [0, 0, 0], sizes = [4, 8, 8], strides = [1, 1, 1]} : vector<4x16x8xbf16> to vector<4x8x8xbf16>
    %35 = vector.extract_strided_slice %33 {offsets = [0, 8, 0], sizes = [4, 8, 8], strides = [1, 1, 1]} : vector<4x16x8xbf16> to vector<4x8x8xbf16>
    %36 = tpu.concatenate %34, %35 in 0 : vector<4x8x8xbf16>, vector<4x8x8xbf16> -> vector<8x8x8xbf16>
    %37 = vector.extract_strided_slice %12 {offsets = [0, 256], sizes = [16, 8], strides = [1, 1]} : vector<16x384xbf16> to vector<16x8xbf16>
    %38 = vector.extract_strided_slice %12 {offsets = [0, 264], sizes = [16, 8], strides = [1, 1]} : vector<16x384xbf16> to vector<16x8xbf16>
    %39 = vector.extract_strided_slice %12 {offsets = [0, 272], sizes = [16, 8], strides = [1, 1]} : vector<16x384xbf16> to vector<16x8xbf16>
    %40 = vector.extract_strided_slice %12 {offsets = [0, 280], sizes = [16, 8], strides = [1, 1]} : vector<16x384xbf16> to vector<16x8xbf16>
    %41 = vector.shape_cast %37 : vector<16x8xbf16> to vector<1x16x8xbf16>
    %42 = vector.shape_cast %38 : vector<16x8xbf16> to vector<1x16x8xbf16>
    %43 = vector.shape_cast %39 : vector<16x8xbf16> to vector<1x16x8xbf16>
    %44 = vector.shape_cast %40 : vector<16x8xbf16> to vector<1x16x8xbf16>
    %45 = tpu.concatenate %41, %42, %43, %44 in 0 : vector<1x16x8xbf16>, vector<1x16x8xbf16>, vector<1x16x8xbf16>, vector<1x16x8xbf16> -> vector<4x16x8xbf16>
    %46 = vector.extract_strided_slice %45 {offsets = [0, 0, 0], sizes = [4, 8, 8], strides = [1, 1, 1]} : vector<4x16x8xbf16> to vector<4x8x8xbf16>
    %47 = vector.extract_strided_slice %45 {offsets = [0, 8, 0], sizes = [4, 8, 8], strides = [1, 1, 1]} : vector<4x16x8xbf16> to vector<4x8x8xbf16>
    %48 = tpu.concatenate %46, %47 in 0 : vector<4x8x8xbf16>, vector<4x8x8xbf16> -> vector<8x8x8xbf16>
    "tpu.trace_start"() <{level = 10 : i32, message = "gqd,gkd->gqk"}> : () -> ()
    %cst_8 = arith.constant dense<0.000000e+00> : vector<8x8x8xf32>
    %49 = tpu.matmul %24, %36, %cst_8 {dimension_numbers = #tpu.dot_dimension_numbers<[2], [2], [1], [1], [0, 0, 0, 1, 1, 1], [0], [0]>} : vector<8x8x8xbf16>, vector<8x8x8xbf16>, vector<8x8x8xf32> -> vector<8x8x8xf32>
    "tpu.trace_stop"() : () -> ()
    %cst_9 = arith.constant dense<0xFF800000> : vector<8x8xf32>
    %50 = vector.multi_reduction <maximumf>, %49, %cst_9 [2] : vector<8x8x8xf32> to vector<8x8xf32>
    %51 = vector.shape_cast %50 : vector<8x8xf32> to vector<8x8x1xf32>
    %52 = vector.broadcast %51 : vector<8x8x1xf32> to vector<8x8x8xf32>
    %53 = arith.subf %49, %52 : vector<8x8x8xf32>
    %54 = math.exp %53 : vector<8x8x8xf32>
    %cst_10 = arith.constant dense<0.000000e+00> : vector<8x8xf32>
    %55 = vector.multi_reduction <add>, %54, %cst_10 [2] : vector<8x8x8xf32> to vector<8x8xf32>
    %56 = vector.shape_cast %55 : vector<8x8xf32> to vector<8x8x1xf32>
    %57 = tpu.reciprocal %56 {approx = true} : vector<8x8x1xf32> -> vector<8x8x1xf32>
    %58 = vector.broadcast %57 : vector<8x8x1xf32> to vector<8x8x8xf32>
    %59 = arith.mulf %54, %58 : vector<8x8x8xf32>
    %60 = arith.truncf %59 : vector<8x8x8xf32> to vector<8x8x8xbf16>
    "tpu.trace_start"() <{level = 10 : i32, message = "gqk,gkd->gqd"}> : () -> ()
    %cst_11 = arith.constant dense<0.000000e+00> : vector<8x8x8xf32>
    %61 = tpu.matmul %60, %48, %cst_11 {dimension_numbers = #tpu.dot_dimension_numbers<[2], [1], [1], [2], [0, 0, 0, 1, 1, 2], [0], [0]>} : vector<8x8x8xbf16>, vector<8x8x8xbf16>, vector<8x8x8xf32> -> vector<8x8x8xf32>
    "tpu.trace_stop"() : () -> ()
    %62 = arith.truncf %61 : vector<8x8x8xf32> to vector<8x8x8xbf16>
    %63 = vector.extract_strided_slice %62 {offsets = [0, 0, 0], sizes = [1, 8, 8], strides = [1, 1, 1]} : vector<8x8x8xbf16> to vector<1x8x8xbf16>
    %64 = vector.shape_cast %63 : vector<1x8x8xbf16> to vector<8x8xbf16>
    %65 = vector.extract_strided_slice %62 {offsets = [1, 0, 0], sizes = [1, 8, 8], strides = [1, 1, 1]} : vector<8x8x8xbf16> to vector<1x8x8xbf16>
    %66 = vector.shape_cast %65 : vector<1x8x8xbf16> to vector<8x8xbf16>
    %67 = vector.extract_strided_slice %62 {offsets = [2, 0, 0], sizes = [1, 8, 8], strides = [1, 1, 1]} : vector<8x8x8xbf16> to vector<1x8x8xbf16>
    %68 = vector.shape_cast %67 : vector<1x8x8xbf16> to vector<8x8xbf16>
    %69 = vector.extract_strided_slice %62 {offsets = [3, 0, 0], sizes = [1, 8, 8], strides = [1, 1, 1]} : vector<8x8x8xbf16> to vector<1x8x8xbf16>
    %70 = vector.shape_cast %69 : vector<1x8x8xbf16> to vector<8x8xbf16>
    %71 = tpu.concatenate %64, %66, %68, %70 in 1 : vector<8x8xbf16>, vector<8x8xbf16>, vector<8x8xbf16>, vector<8x8xbf16> -> vector<8x32xbf16>
    %72 = vector.extract_strided_slice %62 {offsets = [4, 0, 0], sizes = [1, 8, 8], strides = [1, 1, 1]} : vector<8x8x8xbf16> to vector<1x8x8xbf16>
    %73 = vector.shape_cast %72 : vector<1x8x8xbf16> to vector<8x8xbf16>
    %74 = vector.extract_strided_slice %62 {offsets = [5, 0, 0], sizes = [1, 8, 8], strides = [1, 1, 1]} : vector<8x8x8xbf16> to vector<1x8x8xbf16>
    %75 = vector.shape_cast %74 : vector<1x8x8xbf16> to vector<8x8xbf16>
    %76 = vector.extract_strided_slice %62 {offsets = [6, 0, 0], sizes = [1, 8, 8], strides = [1, 1, 1]} : vector<8x8x8xbf16> to vector<1x8x8xbf16>
    %77 = vector.shape_cast %76 : vector<1x8x8xbf16> to vector<8x8xbf16>
    %78 = vector.extract_strided_slice %62 {offsets = [7, 0, 0], sizes = [1, 8, 8], strides = [1, 1, 1]} : vector<8x8x8xbf16> to vector<1x8x8xbf16>
    %79 = vector.shape_cast %78 : vector<1x8x8xbf16> to vector<8x8xbf16>
    %80 = tpu.concatenate %73, %75, %77, %79 in 1 : vector<8x8xbf16>, vector<8x8xbf16>, vector<8x8xbf16>, vector<8x8xbf16> -> vector<8x32xbf16>
    %81 = tpu.concatenate %71, %80 in 0 : vector<8x32xbf16>, vector<8x32xbf16> -> vector<16x32xbf16>
    %c0_12 = arith.constant 0 : index
    %c0_13 = arith.constant 0 : index
    %c0_14 = arith.constant 0 : index
    %82 = vector.load %arg4[%c0_12, %c0_13, %c0_14] : memref<1x32x128xbf16, #tpu.memory_space<vmem>>, vector<1x32x128xbf16>
    %83 = vector.shape_cast %82 : vector<1x32x128xbf16> to vector<32x128xbf16>
    %cst_15 = arith.constant dense<0.000000e+00> : vector<16x128xf32>
    %84 = tpu.matmul %81, %83, %cst_15 {dimension_numbers = #tpu.dot_dimension_numbers<[1], [0], [0], [1], [0, 0, 1, 1], [], []>} : vector<16x32xbf16>, vector<32x128xbf16>, vector<16x128xf32> -> vector<16x128xf32>
    %c0_16 = arith.constant 0 : index
    %c0_17 = arith.constant 0 : index
    %c0_18 = arith.constant 0 : index
    %85 = vector.load %arg5[%c0_16, %c0_17, %c0_18] : memref<1x1x128xf32, #tpu.memory_space<vmem>>, vector<1x1x128xf32>
    %86 = vector.shape_cast %85 : vector<1x1x128xf32> to vector<1x128xf32>
    %87 = vector.broadcast %86 : vector<1x128xf32> to vector<16x128xf32>
    %88 = arith.addf %84, %87 : vector<16x128xf32>
    %89 = arith.truncf %88 : vector<16x128xf32> to vector<16x128xbf16>
    %c0_19 = arith.constant 0 : index
    %c0_20 = arith.constant 0 : index
    %c0_21 = arith.constant 0 : index
    %90 = vector.load %arg6[%c0_19, %c0_20, %c0_21] : memref<1x128x128xbf16, #tpu.memory_space<vmem>>, vector<1x128x128xbf16>
    %91 = vector.shape_cast %90 : vector<1x128x128xbf16> to vector<128x128xbf16>
    %cst_22 = arith.constant dense<0.000000e+00> : vector<16x128xf32>
    %92 = tpu.matmul %89, %91, %cst_22 {dimension_numbers = #tpu.dot_dimension_numbers<[1], [0], [0], [1], [0, 0, 1, 1], [], []>} : vector<16x128xbf16>, vector<128x128xbf16>, vector<16x128xf32> -> vector<16x128xf32>
    %c0_23 = arith.constant 0 : index
    %c0_24 = arith.constant 0 : index
    %c0_25 = arith.constant 0 : index
    %93 = vector.load %arg7[%c0_23, %c0_24, %c0_25] : memref<1x1x128xf32, #tpu.memory_space<vmem>>, vector<1x1x128xf32>
    %94 = vector.shape_cast %93 : vector<1x1x128xf32> to vector<1x128xf32>
    %95 = vector.broadcast %94 : vector<1x128xf32> to vector<16x128xf32>
    %96 = arith.addf %92, %95 : vector<16x128xf32>
    %97 = arith.mulf %96, %96 : vector<16x128xf32>
    %98 = arith.mulf %96, %97 : vector<16x128xf32>
    %cst_26 = arith.constant 4.471500e-02 : f32
    %99 = vector.broadcast %cst_26 : f32 to vector<16x128xf32>
    %100 = arith.mulf %99, %98 : vector<16x128xf32>
    %101 = arith.addf %96, %100 : vector<16x128xf32>
    %cst_27 = arith.constant 0.797884583 : f32
    %102 = vector.broadcast %cst_27 : f32 to vector<16x128xf32>
    %103 = arith.mulf %102, %101 : vector<16x128xf32>
    %104 = math.tanh %103 : vector<16x128xf32>
    %cst_28 = arith.constant 1.000000e+00 : f32
    %105 = vector.broadcast %cst_28 : f32 to vector<16x128xf32>
    %106 = arith.addf %105, %104 : vector<16x128xf32>
    %cst_29 = arith.constant 5.000000e-01 : f32
    %107 = vector.broadcast %cst_29 : f32 to vector<16x128xf32>
    %108 = arith.mulf %107, %106 : vector<16x128xf32>
    %109 = arith.mulf %96, %108 : vector<16x128xf32>
    %110 = arith.truncf %109 : vector<16x128xf32> to vector<16x128xbf16>
    %c0_30 = arith.constant 0 : index
    %c0_31 = arith.constant 0 : index
    %c0_32 = arith.constant 0 : index
    %111 = vector.load %arg8[%c0_30, %c0_31, %c0_32] : memref<1x128x128xbf16, #tpu.memory_space<vmem>>, vector<1x128x128xbf16>
    %112 = vector.shape_cast %111 : vector<1x128x128xbf16> to vector<128x128xbf16>
    %cst_33 = arith.constant dense<0.000000e+00> : vector<16x128xf32>
    %113 = tpu.matmul %110, %112, %cst_33 {dimension_numbers = #tpu.dot_dimension_numbers<[1], [0], [0], [1], [0, 0, 1, 1], [], []>} : vector<16x128xbf16>, vector<128x128xbf16>, vector<16x128xf32> -> vector<16x128xf32>
    %c0_34 = arith.constant 0 : index
    %c0_35 = arith.constant 0 : index
    %c0_36 = arith.constant 0 : index
    %114 = vector.load %arg9[%c0_34, %c0_35, %c0_36] : memref<1x1x128xf32, #tpu.memory_space<vmem>>, vector<1x1x128xf32>
    %115 = vector.shape_cast %114 : vector<1x1x128xf32> to vector<1x128xf32>
    %116 = vector.broadcast %115 : vector<1x128xf32> to vector<16x128xf32>
    %117 = arith.addf %113, %116 : vector<16x128xf32>
    %c0_37 = arith.constant 0 : index
    %c0_38 = arith.constant 0 : index
    %118 = vector.load %arg10[%c0_37, %c0_38] : memref<16x128xf32, #tpu.memory_space<vmem>>, vector<16x128xf32>
    tpu.vector_store %arg10[%c0_37, %c0_38], %117 {strides = array<i32>} : memref<16x128xf32, #tpu.memory_space<vmem>>, vector<16x128xf32>,
    return
  }
  func.func @transform_0(%arg0: i32) -> (i32, i32) {
    %c0_i32 = arith.constant 0 : i32
    %c0_i32_0 = arith.constant 0 : i32
    %c0_i32_1 = arith.constant 0 : i32
    return %c0_i32, %c0_i32_0 : i32, i32
  }
  func.func @transform_1(%arg0: i32) -> (i32, i32, i32) {
    %c0_i32 = arith.constant 0 : i32
    %c0_i32_0 = arith.constant 0 : i32
    %c0_i32_1 = arith.constant 0 : i32
    return %arg0, %c0_i32, %c0_i32_0 : i32, i32, i32
  }
  func.func @transform_2(%arg0: i32) -> (i32, i32, i32) {
    %c0_i32 = arith.constant 0 : i32
    %c0_i32_0 = arith.constant 0 : i32
    %c0_i32_1 = arith.constant 0 : i32
    return %arg0, %c0_i32, %c0_i32_0 : i32, i32, i32
  }
  func.func @transform_3(%arg0: i32) -> (i32, i32, i32) {
    %c0_i32 = arith.constant 0 : i32
    %c0_i32_0 = arith.constant 0 : i32
    %c0_i32_1 = arith.constant 0 : i32
    return %arg0, %c0_i32, %c0_i32_0 : i32, i32, i32
  }
  func.func @transform_4(%arg0: i32) -> (i32, i32, i32) {
    %c0_i32 = arith.constant 0 : i32
    %c0_i32_0 = arith.constant 0 : i32
    %c0_i32_1 = arith.constant 0 : i32
    return %arg0, %c0_i32, %c0_i32_0 : i32, i32, i32
  }
  func.func @transform_5(%arg0: i32) -> (i32, i32, i32) {
    %c0_i32 = arith.constant 0 : i32
    %c0_i32_0 = arith.constant 0 : i32
    %c0_i32_1 = arith.constant 0 : i32
    return %arg0, %c0_i32, %c0_i32_0 : i32, i32, i32
  }
  func.func @transform_6(%arg0: i32) -> (i32, i32, i32) {
    %c0_i32 = arith.constant 0 : i32
    %c0_i32_0 = arith.constant 0 : i32
    %c0_i32_1 = arith.constant 0 : i32
    return %arg0, %c0_i32, %c0_i32_0 : i32, i32, i32
  }
  func.func @transform_7(%arg0: i32) -> (i32, i32, i32) {
    %c0_i32 = arith.constant 0 : i32
    %c0_i32_0 = arith.constant 0 : i32
    %c0_i32_1 = arith.constant 0 : i32
    return %arg0, %c0_i32, %c0_i32_0 : i32, i32, i32
  }
  func.func @transform_8(%arg0: i32) -> (i32, i32, i32) {
    %c0_i32 = arith.constant 0 : i32
    %c0_i32_0 = arith.constant 0 : i32
    %c0_i32_1 = arith.constant 0 : i32
    return %arg0, %c0_i32, %c0_i32_0 : i32, i32, i32
  }
  func.func @transform_9(%arg0: i32) -> (i32, i32) {
    %c0_i32 = arith.constant 0 : i32
    %c0_i32_0 = arith.constant 0 : i32
    %c0_i32_1 = arith.constant 0 : i32
    return %c0_i32, %c0_i32_0 : i32, i32
  }
}

</mosaic_0001>

<bundles_post_ra>
// kernel: tpu_custom_call.1
= control target key start
LH: loop header
LB: loop body
LE: loop exit
PB: predicated region body
PF: predicated region fallthrough
CT: control target
= control target key end

     0   :  { %s2829_s0 = inlined_call_operand.hbm [shape: f32[16,128], index: 0, kind: input, shape index: {}]   ;;  %s2830_s1 = inlined_call_operand.hbm [shape: bf16[2,128,384], index: 1, kind: input, shape index: {}]   ;;  %s2831_s2 = inlined_call_operand.hbm [shape: f32[2,1,384], index: 2, kind: input, shape index: {}]   ;;  %s2832_s3 = inlined_call_operand.hbm [shape: bf16[2,32,128], index: 3, kind: input, shape index: {}]   ;;  %s2833_s4 = inlined_call_operand.vmem [shape: f32[2,1,128], index: 4, kind: input, shape index: {}]   ;;  %s2834_s5 = inlined_call_operand.hbm [shape: bf16[2,128,128], index: 5, kind: input, shape index: {}]   ;;  %s2835_s6 = inlined_call_operand.vmem [shape: f32[2,1,128], index: 6, kind: input, shape index: {}]   ;;  %s2836_s7 = inlined_call_operand.hbm [shape: bf16[2,128,128], index: 7, kind: input, shape index: {}]   ;;  %s2837_s8 = inlined_call_operand.vmem [shape: f32[2,1,128], index: 8, kind: input, shape index: {}]   ;;  %s2838_s9 = inlined_call_operand.hbm [shape: f32[16,128], index: 9, kind: output, shape index: {}]  }
   0x1   :  { %2847 = sst [smem:[#allocation22_spill]] %s2829_s0 }
   0x2   :  { %2848 = sst [smem:[#allocation23_spill]] %s2830_s1 }
   0x3   :  { %2849 = sst [smem:[#allocation24_spill]] %s2832_s3 }
   0x4   :  { %2850 = sst [smem:[#allocation25_spill]] %s2837_s8 }
   0x5   :  { %2851 = sst [smem:[#allocation26_spill]] %s2838_s9 }
   0x6   :  { %14 = vsyncpa [#allocation3], 0 }
   0x7   :  { %15 = vsyncpa [#allocation6], 0 }
   0x8   :  { %17 = vsyncpa [#allocation6 + $0x1], 0 }
   0x9   :  { %18 = vsyncpa [#allocation9], 0 }
   0xa   :  { %20 = vsyncpa [#allocation9 + $0x1], 0 }
   0xb   :  { %21 = vsyncpa [#allocation12], 0 }
   0xc   :  { %23 = vsyncpa [#allocation12 + $0x1], 0 }
   0xd   :  { %24 = vsyncpa [#allocation4], 0  ;;  %s2404_s30 = smov 0   ;;  %s2406_s10 = smov 0  }
   0xe   :  { %s2408_s11 = smov 0   ;;  %s2410_s12 = smov 0  }
   0xf LB: > { %2852 = sst [smem:[#allocation19_spill]] %s2333_s11  ;;  %s2425_s13 = sadd.s32 1, %s2337_s12   ;;  %s2337_s12 = sphi %s2410_s12, %s2869_s12   ;;  %s2333_s11 = sphi %s2408_s11, %s2871_s11   ;;  %s2329_s10 = sphi %s2406_s10, %s2873_s10   ;;  %s2325_s30 = sphi %s2404_s30, %s2872_s30  }
  0x10   : > { %2853 = sst [smem:[#allocation20_spill]] %s2425_s13  ;;  %s58_s14 = sadd.s32 1, %s2333_s11 }
  0x11   : > { %s55_s15 = ssub.s32 %s2337_s12, %s2425_s13  ;;  %p65_p0 = scmp.ne.s32.totalorder %s2333_s11, %s2329_s10 }
  0x12   : > { %p56_p1 = scmp.eq.s32.totalorder %s55_s15, 0  ;;  %p66_p2 = scmp.eq.s32.totalorder %s2337_s12, 0 }
  0x13   : > { %p1989_p3 = scmp.lt.s32.totalorder %s2337_s12, 2  ;;  %s2839_s17 = sand.u32 1, %s2337_s12  }
  0x14   : > { %s2435_s16 = scalar_select %p56_p1, %s2333_s11, %s58_s14  }
  0x15   : > { %p67_p4 = por %p66_p2, %p65_p0  ;;  %s2439_s18 = sand.u32 1, %s2333_s11  }
  0x16   : > { %2854 = sst [smem:[#allocation21_spill]] %s2435_s16  ;;  %s1944_s19 = smul.u32 192, %s2439_s18 }
  0x17   : > { %p2442_p5 = pnand %p1989_p3, %p67_p4  ;;  %s1945_s21 = smul.u32 192, %s2337_s12 }
  0x18   : > { %s2856_s1 = sld [smem:[#allocation23_spill]]  ;;  %s316_s25 = scalar_lea.vmem [#allocation5], %s1944_s19 }
  0x19   : > { %s324_s26 = sshll.u32 %s316_s25, 4  ;;  %s2452_s28 = scalar_lea.sflag [#allocation6], %s2839_s17  ;;  %s325_s26 = int_to_ptr.vmem [resolvable:$true] %s324_s26 }
  0x1a   : > { %p2456_p7 = pneg %p2442_p5 }
  0x1e   : > { %s321_s24 = scalar_lea.hbm %s2856_s1, %s1945_s21  ;;  %s2086_s22 = scalar_lea.hbm %s2856_s1, 384 }
  0x1f   : > { %s322_s27 = sshll.u32 %s321_s24, 4  ;;  %s323_s27 = int_to_ptr.hbm [resolvable:$true] %s322_s27 }
  0x20   : > { %s2079_s29 = sshra.s32 %s323_s27, 4  ;;  %s2080_s29 = int_to_ptr.hbm [resolvable:$true] %s2079_s29 }
  0x21   : > { %s2081_s14 = scalar_lea.hbm %s2080_s29, 192  ;;  %p2087_p10 = scmp.lt.s32.totalorder %s2080_s29, %s2856_s1 }
  0x22   : > { %p2082_p6 = scmp.ne.s32.totalorder %s2080_s29, %s2081_s14  ;;  %p2088_p11 = scmp.lt.s32.totalorder %s2086_s22, %s2081_s14 }
  0x24   : > { %p2084_p8 = pnand %p2456_p7, %p2082_p6  ;;  %p2089_p12 = por %p2088_p11, %p2087_p10 }
  0x26   : > { %p2085_p9 = pneg %p2084_p8 }
  0x28   : > { %p2090_p13 = pnand %p2089_p12, %p2085_p9 }
  0x2a   : > { %2093 = shalt.err (!%p2090_p13)
}
  0x2b   : > { %s2339_s25 = smov 192   ;;  %s2340_s17 = smov 12  }
  0x2c   : > { %1975 = dma.hbm_to_vmem [thread:$0]  (!%p2442_p5), %s323_s27, 3072, %s325_s26, %s2452_s28, %s2339_s25, %s2339_s25, %s2340_s17  }
  0x2d   : > { %s1695_s19 = sshll.u32 %s2439_s18, 4  ;;  %s1899_s21 = sshll.u32 %s2337_s12, 4 }
  0x2e   : > { %s2858_s3 = sld [smem:[#allocation24_spill]]  ;;  %s357_s14 = scalar_lea.vmem [#allocation8], %s1695_s19 }
  0x2f   : > { %s365_s22 = sshll.u32 %s357_s14, 4  ;;  %s2859_s24 = sand.u32 1, %s2337_s12   ;;  %s366_s22 = int_to_ptr.vmem [resolvable:$true] %s365_s22 }
  0x30   : > { %s2478_s1 = scalar_lea.sflag [#allocation9], %s2859_s24 }
  0x34   : > { %s362_s29 = scalar_lea.hbm %s2858_s3, %s1899_s21  ;;  %s2116_s11 = scalar_lea.hbm %s2858_s3, 32 }
  0x35   : > { %s363_s23 = sshll.u32 %s362_s29, 4  ;;  %s364_s23 = int_to_ptr.hbm [resolvable:$true] %s363_s23 }
  0x36   : > { %s2109_s13 = sshra.s32 %s364_s23, 4  ;;  %s2110_s13 = int_to_ptr.hbm [resolvable:$true] %s2109_s13 }
  0x37   : > { %s2111_s9 = scalar_lea.hbm %s2110_s13, 16  ;;  %p2117_p3 = scmp.lt.s32.totalorder %s2110_s13, %s2858_s3 }
  0x38   : > { %p2112_p0 = scmp.ne.s32.totalorder %s2110_s13, %s2111_s9  ;;  %p2118_p4 = scmp.lt.s32.totalorder %s2116_s11, %s2111_s9 }
  0x3a   : > { %p2114_p1 = pnand %p2112_p0, %p2456_p7  ;;  %p2119_p6 = por %p2118_p4, %p2117_p3 }
  0x3c   : > { %p2115_p2 = pneg %p2114_p1 }
  0x3e   : > { %p2120_p8 = pnand %p2119_p6, %p2115_p2 }
  0x40   : > { %2123 = shalt.err (!%p2120_p8)
}
  0x41   : > { %s2843_s25 = smov 64   ;;  %s2845_s19 = smov 4  }
  0x42   : > { %1981 = dma.hbm_to_vmem [thread:$0]  (!%p2442_p5), %s364_s23, 256, %s366_s22, %s2478_s1, %s2843_s25, %s2843_s25, %s2845_s19  }
  0x43   : > { %s2495_s13 = sadd.s32 4294967295, %s2337_s12   ;;  %p71_p9 = scmp.ne.s32.totalorder %s2329_s10, %s2325_s30 }
  0x44   : > { %p72_p10 = scmp.eq.s32.totalorder %s2495_s13, 0  ;;  %p1691_p11 = scmp.ge.s32.totalorder %s2337_s12, 1 }
  0x45   : > { %p285_p12 = scmp.lt.s32.totalorder %s2337_s12, 3  ;;  %p1692_p0 = scmp.ne.s32.totalorder %s2495_s13, 0 }
  0x46   : > { %p2504_p13 = por %p72_p10, %p71_p9  ;;  %s2862_s0 = sld [smem:[#allocation22_spill]] }
  0x47   : > { %p2509_p1 = pnand %p1691_p11, %p285_p12  ;;  %s2343_s30 = smov [#allocation2]  }
  0x48   : > { %s298_s23 = sshll.u32 %s2343_s30, 4  ;;  %s1946_s24 = smul.u32 3, %s2439_s18  ;;  %s299_s23 = int_to_ptr.vmem [resolvable:$true] %s298_s23 }
  0x49   : > { %p1968_p2 = pneg %p2509_p1  ;;  %s1947_s26 = smul.u32 3, %s2337_s12 }
  0x4a   : > { %s2344_s11 = smov 128   ;;  %s2345_s16 = smov 8  }
  0x4b   : > { %p1969_p3 = pnand %p1968_p2, %p72_p10  ;;  %s342_s29 = scalar_lea.hbm %s2831_s2, %s1947_s26 }
  0x4c   : > { %s296_s22 = sshll.u32 %s2862_s0, 4  ;;  %s344_s14 = sshll.u32 %s342_s29, 4  ;;  %s297_s22 = int_to_ptr.hbm [resolvable:$true] %s296_s22  ;;  %s345_s14 = int_to_ptr.hbm [resolvable:$true] %s344_s14 }
  0x4d   : > { %1971 = dma.hbm_to_vmem [thread:$0]  (!%p1969_p3), %s297_s22, 256, %s299_s23, [#allocation3], %s2344_s11, %s2344_s11, %s2345_s16  }
  0x4e   : > { %s338_s19 = scalar_lea.vmem [#allocation7], %s1946_s24  ;;  %s2169_s30 = sshra.s32 %s345_s14, 4  ;;  %s2170_s30 = int_to_ptr.hbm [resolvable:$true] %s2169_s30 }
  0x4f   : > { %s346_s0 = sshll.u32 %s338_s19, 4  ;;  %s2171_s3 = scalar_lea.hbm %s2170_s30, 3  ;;  %s347_s0 = int_to_ptr.vmem [resolvable:$true] %s346_s0 }
  0x50   : > { %p2172_p4 = scmp.ne.s32.totalorder %s2170_s30, %s2171_s3  ;;  %s2176_s22 = scalar_lea.hbm %s2831_s2, 6 }
  0x51   : > { %p2177_p9 = scmp.lt.s32.totalorder %s2170_s30, %s2831_s2  ;;  %p2178_p11 = scmp.lt.s32.totalorder %s2176_s22, %s2171_s3 }
  0x52   : > { %p2174_p6 = pnand %p2172_p4, %p2456_p7 }
  0x53   : > { %p2179_p12 = por %p2178_p11, %p2177_p9 }
  0x54   : > { %p2175_p8 = pneg %p2174_p6 }
  0x56   : > { %p2180_p2 = pnand %p2179_p12, %p2175_p8 }
  0x58   : > { %2183 = shalt.err (!%p2180_p2)
}
  0x59   : > { %1978 = dma.hbm_to_vmem [thread:$0]  (!%p2442_p5), %s345_s14, 48, %s347_s0, %s2452_s28  }
  0x5a   : > { %s1900_s25 = sshll.u32 %s2337_s12, 6  ;;  %s2863_s17 = sshll.u32 %s2439_s18, 6 }
  0x5b   : > { %s390_s8 = scalar_lea.hbm %s2834_s5, %s1900_s25  ;;  %s385_s26 = scalar_lea.vmem [#allocation10], %s2863_s17 }
  0x5c   : > { %s393_s16 = sshll.u32 %s385_s26, 4  ;;  %s391_s27 = sshll.u32 %s390_s8, 4  ;;  %s394_s16 = int_to_ptr.vmem [resolvable:$true] %s393_s16  ;;  %s392_s27 = int_to_ptr.hbm [resolvable:$true] %s391_s27 }
  0x5d   : > { %s2199_s3 = sshra.s32 %s392_s27, 4  ;;  %s2206_s12 = scalar_lea.hbm %s2834_s5, 128  ;;  %s2200_s3 = int_to_ptr.hbm [resolvable:$true] %s2199_s3 }
  0x5e   : > { %s2201_s29 = scalar_lea.hbm %s2200_s3, 64  ;;  %p2207_p8 = scmp.lt.s32.totalorder %s2200_s3, %s2834_s5 }
  0x5f   : > { %p2202_p3 = scmp.ne.s32.totalorder %s2200_s3, %s2201_s29  ;;  %p2208_p9 = scmp.lt.s32.totalorder %s2206_s12, %s2201_s29 }
  0x61   : > { %p2204_p4 = pnand %p2202_p3, %p2456_p7  ;;  %p2209_p11 = por %p2208_p9, %p2207_p8 }
  0x63   : > { %p2205_p6 = pneg %p2204_p4 }
  0x65   : > { %p2210_p12 = pnand %p2209_p11, %p2205_p6 }
  0x67   : > { %2213 = shalt.err (!%p2210_p12)
}
  0x68   : > { %s2864_s22 = smov 4   ;;  %s2865_s23 = smov 64  }
  0x69   : > { %1984 = dma.hbm_to_vmem [thread:$0]  (!%p2442_p5), %s392_s27, 1024, %s394_s16, %s2478_s1, %s2865_s23, %s2865_s23, %s2864_s22  }
  0x6a   : > { %s418_s24 = scalar_lea.hbm %s2836_s7, %s1900_s25  ;;  %s413_s26 = scalar_lea.vmem [#allocation11], %s2863_s17 }
  0x6b   : > { %s419_s8 = sshll.u32 %s418_s24, 4  ;;  %s421_s3 = sshll.u32 %s413_s26, 4  ;;  %s420_s8 = int_to_ptr.hbm [resolvable:$true] %s419_s8  ;;  %s422_s3 = int_to_ptr.vmem [resolvable:$true] %s421_s3 }
  0x6c   : > { %s410_s29 = scalar_lea.sflag [#allocation12], %s2439_s18  ;;  %s2229_s30 = sshra.s32 %s420_s8, 4  ;;  %s2230_s30 = int_to_ptr.hbm [resolvable:$true] %s2229_s30 }
  0x6d   : > { %s2231_s0 = scalar_lea.hbm %s2230_s30, 64  ;;  %s2236_s16 = scalar_lea.hbm %s2836_s7, 128 }
  0x6e   : > { %p2232_p2 = scmp.ne.s32.totalorder %s2230_s30, %s2231_s0  ;;  %p2237_p6 = scmp.lt.s32.totalorder %s2230_s30, %s2836_s7 }
  0x6f   : > { %p2238_p8 = scmp.lt.s32.totalorder %s2236_s16, %s2231_s0 }
  0x70   : > { %p2234_p3 = pnand %p2232_p2, %p2456_p7 }
  0x71   : > { %p2239_p9 = por %p2238_p8, %p2237_p6 }
  0x72   : > { %p2235_p4 = pneg %p2234_p3 }
  0x74   : > { %p2240_p11 = pnand %p2239_p9, %p2235_p4 }
  0x76   : > { %2243 = shalt.err (!%p2240_p11)
}
  0x77   : > { %1987 = dma.hbm_to_vmem [thread:$0]  (!%p2442_p5), %s420_s8, 1024, %s422_s3, %s410_s29, %s2865_s23, %s2865_s23, %s2864_s22  }
  0x78   : > { %439 = sbr.rel (%p2509_p1) target bundleno = 1630 (0x65e), region = 56 }
  0x7d   : > { %2304 = dma.done.wait (%p72_p10), [#allocation3], 256  }
  0x7e   : > { %2306 = vsyncadd (%p72_p10), [#allocation3], 4294967040  ;;  %s446_s18 = sand.u32 1, %s2495_s13   ;;  %s448_s15 = sand.u32 1, %s2329_s10  }
  0x7f   : > { %s1948_s28 = smul.u32 192, %s448_s15  ;;  %s447_s20 = scalar_lea.sflag [#allocation6], %s446_s18 }
  0x81   : > { %s2584_s14 = scalar_lea.vmem [#allocation5], %s1948_s28 }
  0x82   : > { %2308 = dma.done.wait (%p2504_p13), %s447_s20, 3120  }
  0x83   : > { %2310 = vsyncadd (%p2504_p13), %s447_s20, 4294964176  ;;  %s1949_s21 = smul.u32 3, %s448_s15  ;;  %s1706_s22 = sshll.u32 %s448_s15, 4 }
  0x84   : > { %s467_s11 = scalar_lea.sflag [#allocation9], %s446_s18  ;;  %s2592_s19 = scalar_lea.vmem [#allocation8], %s1706_s22 }
  0x85   : > { %s2590_s23 = scalar_lea.vmem [#allocation7], %s1949_s21 }
  0x86   : > { %2312 = dma.done.wait (%p2504_p13), %s467_s11, 1280  }
  0x87   : > { %2314 = vsyncadd (%p2504_p13), %s467_s11, 4294966016  ;;  %s1707_s24 = sshll.u32 %s448_s15, 6  ;;  %s487_s17 = scalar_lea.sflag [#allocation12], %s448_s15 }
  0x88   : > { %s2598_s8 = scalar_lea.vmem [#allocation10], %s1707_s24  ;;  %s2600_s26 = scalar_lea.vmem [#allocation11], %s1707_s24 }
  0x89   : > { %2316 = dma.done.wait (%p2504_p13), %s487_s17, 1024  }
  0x8a   : > { %2318 = vsyncadd (%p2504_p13), %s487_s17, 4294966272  ;;  %p550_p5 = scmp.lt.s32.totalorder %s2495_s13, 1  ;;  %s2866_s9 = sld [smem:[#allocation25_spill]] }
  0x8c   : > { %s2608_s3 = scalar_select %p550_p5, %s2495_s13, 1 }
  0x8d   : > { %563 = sbr.rel (%p1692_p0) target bundleno = 149 (0x95), region = 84 }
  0x8e   : > { %s552_s0 = scalar_lea.vmem %s2833_s4, %s2608_s3  ;;  %s555_s16 = scalar_lea.vmem %s2835_s6, %s2608_s3 }
  0x90   : > { %s558_s18 = scalar_lea.vmem %s2866_s9, %s2608_s3 }
  0x92   : > { %v564_v0 = vld [vmem:[#allocation2] sm:$0xff]  ;;  %v565_v1 = vld [vmem:[#allocation2 + $0x8] sm:$0xff] }
  0x93   : > { %566 = vst [vmem:[#allocation13] sm:$0xff] %v564_v0 }
  0x94   : > { %567 = vst [vmem:[#allocation13 + $0x8] sm:$0xff] %v565_v1 }
  0x95 PF: > { %v1796_v2 = vld [vmem:[%s2584_s14 + $0xa8] sm:$0xf]  ;;  %v1924_v3 = vld [vmem:[%s2584_s14 + $0xb0] sm:$0xf0]  ;;  %v1923_v4 = vld [vmem:[%s2584_s14 + $0xac] sm:$0xf] }
  0x96   : > { %v1797_v5 = vor.u32 %v1924_v3, %v1796_v2  ;;  %v1798_v6 = vld [vmem:[%s2584_s14 + $0xb4] sm:$0xf0]  ;;  %v1784_v7 = vld [vmem:[%s2584_s14 + $0x90] sm:$0xf]  ;;  %v1921_v8 = vld [vmem:[%s2584_s14 + $0x98] sm:$0xf0] }
  0x97   : > { %v1801_v9 = vor.u32 %v1923_v4, %v1798_v6  ;;  %v1920_v10 = vld [vmem:[%s2584_s14 + $0x94] sm:$0xf]  ;;  %v1786_v11 = vld [vmem:[%s2584_s14 + $0x9c] sm:$0xf0]  ;;  %v1785_v12 = vor.u32 %v1921_v8, %v1784_v7  ;;  %v1772_v14 = vld [vmem:[%s2584_s14 + $0x78] sm:$0xf] }
  0x98   : > { %739 = vmatpush.bf16.msra.mxu0 %v1797_v5  ;;  %v1789_v13 = vor.u32 %v1920_v10, %v1786_v11  ;;  %v1918_v15 = vld [vmem:[%s2584_s14 + $0x80] sm:$0xf0]  ;;  %v1917_v16 = vld [vmem:[%s2584_s14 + $0x7c] sm:$0xf]  ;;  %v1774_v17 = vld [vmem:[%s2584_s14 + $0x84] sm:$0xf0] }
  0x99   : > { %753 = vmatpush.bf16.msra.mxu1 %v1801_v9  ;;  %v1773_v18 = vor.u32 %v1918_v15, %v1772_v14  ;;  %v1777_v19 = vor.u32 %v1917_v16, %v1774_v17  ;;  %v1760_v20 = vld [vmem:[%s2584_s14 + $0x60] sm:$0xf]  ;;  %v1915_v21 = vld [vmem:[%s2584_s14 + $0x68] sm:$0xf0]  ;;  %v1914_v22 = vld [vmem:[%s2584_s14 + $0x64] sm:$0xf] }
  0x9a   : > { %v1762_v23 = vld [vmem:[%s2584_s14 + $0x6c] sm:$0xf0]  ;;  %v1761_v24 = vor.u32 %v1915_v21, %v1760_v20  ;;  %v1748_v25 = vld [vmem:[%s2584_s14 + $0x48] sm:$0xf]  ;;  %v1912_v27 = vld [vmem:[%s2584_s14 + $0x50] sm:$0xf0] }
  0x9b   : > { %v1765_v26 = vor.u32 %v1914_v22, %v1762_v23  ;;  %v1911_v28 = vld [vmem:[%s2584_s14 + $0x4c] sm:$0xf]  ;;  %v1750_v29 = vld [vmem:[%s2584_s14 + $0x54] sm:$0xf0]  ;;  %v1749_v30 = vor.u32 %v1912_v27, %v1748_v25  ;;  %v1736_v32 = vld [vmem:[%s2584_s14 + $0x30] sm:$0xf] }
  0x9c   : > { %740 = vmatpush.bf16.msra.mxu0 %v1785_v12  ;;  %v1753_v31 = vor.u32 %v1911_v28, %v1750_v29  ;;  %v1909_v33 = vld [vmem:[%s2584_s14 + $0x38] sm:$0xf0]  ;;  %v1908_v34 = vld [vmem:[%s2584_s14 + $0x34] sm:$0xf]  ;;  %v1738_v35 = vld [vmem:[%s2584_s14 + $0x3c] sm:$0xf0] }
  0x9d   : > { %754 = vmatpush.bf16.msra.mxu1 %v1789_v13  ;;  %v1737_v36 = vor.u32 %v1909_v33, %v1736_v32  ;;  %v1741_v37 = vor.u32 %v1908_v34, %v1738_v35  ;;  %v1724_v38 = vld [vmem:[%s2584_s14 + $0x18] sm:$0xf]  ;;  %v1906_v39 = vld [vmem:[%s2584_s14 + $0x20] sm:$0xf0]  ;;  %v1905_v40 = vld [vmem:[%s2584_s14 + $0x1c] sm:$0xf] }
  0x9e   : > { %v1726_v41 = vld [vmem:[%s2584_s14 + $0x24] sm:$0xf0]  ;;  %v1725_v42 = vor.u32 %v1906_v39, %v1724_v38  ;;  %v1712_v44 = vld [vmem:[%s2584_s14] sm:$0xf]  ;;  %v1903_v45 = vld [vmem:[%s2584_s14 + $0x8] sm:$0xf0] }
  0x9f   : > { %v1729_v43 = vor.u32 %v1905_v40, %v1726_v41  ;;  %v1902_v46 = vld [vmem:[%s2584_s14 + $0x4] sm:$0xf]  ;;  %v1714_v47 = vld [vmem:[%s2584_s14 + $0xc] sm:$0xf0]  ;;  %v1713_v48 = vor.u32 %v1903_v45, %v1712_v44  ;;  %v1925_v54 = vld [vmem:[%s2584_s14 + $0xb8] sm:$0xf0] }
  0xa0   : > { %741 = vmatpush.bf16.msra.mxu0 %v1773_v18  ;;  %v568_v49 = vld [vmem:[#allocation13] sm:$0xff]  ;;  %v569_v50 = vld [vmem:[#allocation13 + $0x8] sm:$0xff]  ;;  %v1717_v51 = vor.u32 %v1902_v46, %v1714_v47  ;;  %v1792_v55 = vld [vmem:[%s2584_s14 + $0x98] sm:$0xf]  ;;  %vm821_vm0 = vcmask 64512   ;;  %s2346_s15 = smov 104  }
  0xa1   : > { %755 = vmatpush.bf16.msra.mxu1 %v1777_v19  ;;  %v2656_v52 = vpack.c.bf16 %v569_v50, %v568_v49  ;;  %v1804_v53 = vld [vmem:[%s2584_s14 + $0xb0] sm:$0xf]  ;;  %v1922_v57 = vld [vmem:[%s2584_s14 + $0xa0] sm:$0xf0]  ;;  %v1780_v60 = vld [vmem:[%s2584_s14 + $0x80] sm:$0xf] }
  0xa2   : > { %v1805_v56 = vor.u32 %v1925_v54, %v1804_v53  ;;  %v2665_v58 = vld [vmem:[%s2590_s23] sm:$0x7]  ;;  %v1793_v59 = vor.u32 %v1922_v57, %v1792_v55  ;;  %v1919_v61 = vld [vmem:[%s2584_s14 + $0x88] sm:$0xf0]  ;;  %v1768_v2 = vld [vmem:[%s2584_s14 + $0x68] sm:$0xf] }
  0xa3   : > { %v605_v62 = vperm.slane %v2665_v58, 0  ;;  %v606_v63 = vperm.slane %v2665_v58, 1  ;;  %v1781_v0 = vor.u32 %v1919_v61, %v1780_v60  ;;  %v1916_v3 = vld [vmem:[%s2584_s14 + $0x70] sm:$0xf0]  ;;  %s2347_s28 = smov 120   ;;  %s2348_s20 = smov 112  }
  0xa4   : > { %742 = vmatpush.bf16.msra.mxu0 %v1761_v24  ;;  %767 = vmatpush.bf16.msra.mxu2 %v1805_v56  ;;  %v1769_v7 = vor.u32 %v1916_v3, %v1768_v2  ;;  %v1756_v18 = vld [vmem:[%s2584_s14 + $0x50] sm:$0xf]  ;;  %v1913_v19 = vld [vmem:[%s2584_s14 + $0x58] sm:$0xf0]  ;;  %v1744_v20 = vld [vmem:[%s2584_s14 + $0x38] sm:$0xf] }
  0xa5   : > { %756 = vmatpush.bf16.msra.mxu1 %v1765_v26  ;;  %v1757_v21 = vor.u32 %v1913_v19, %v1756_v18  ;;  %v1910_v22 = vld [vmem:[%s2584_s14 + $0x40] sm:$0xf0]  ;;  %v1732_v24 = vld [vmem:[%s2584_s14 + $0x20] sm:$0xf]  ;;  %v1907_v25 = vld [vmem:[%s2584_s14 + $0x28] sm:$0xf0] }
  0xa6   : > { %v1745_v23 = vor.u32 %v1910_v22, %v1744_v20  ;;  %v1720_v26 = vld [vmem:[%s2584_s14 + $0x8] sm:$0xf]  ;;  %v1733_v27 = vor.u32 %v1907_v25, %v1732_v24  ;;  %v1904_v28 = vld [vmem:[%s2584_s14 + $0x10] sm:$0xf0]  ;;  %v607_v54 = vperm.slane %v2665_v58, 2  ;;  %vm1073_vm1 = vcmask 1043456  }
  0xa7   : > { %v1721_v29 = vor.u32 %v1904_v28, %v1720_v26  ;;  %s2349_s14 = smov 8   ;;  %s2350_s21 = smov 16   ;;  %vm1249_vm2 = vcmask 130048   ;;  %vm1252_vm3 = vcmask 195584   ;;  %vm1301_vm4 = vcmask 261120  }
  0xa8   : > { %743 = vmatpush.bf16.msra.mxu0 %v1749_v30  ;;  %768 = vmatpush.bf16.msra.mxu2 %v1793_v59  ;;  %s2351_s22 = smov 24   ;;  %s2352_s29 = smov [#allocation13]  }
  0xa9   : > { %757 = vmatpush.bf16.msra.mxu1 %v1753_v31  ;;  %s1509_s30 = sshll.u32 %s2352_s29, 4  ;;  %s2868_s1 = sld [smem:[#allocation26_spill]]  ;;  %s1510_s30 = int_to_ptr.vmem [resolvable:$true] %s1509_s30 }
  0xaa   : > { %p1991_p7 = scmp.eq.s32.totalorder %s2495_s13, 1  ;;  %s2353_s27 = smov 128  }
  0xac   : > { %744 = vmatpush.bf16.msra.mxu0 %v1737_v36  ;;  %769 = vmatpush.bf16.msra.mxu2 %v1781_v0 }
  0xad   : > { %758 = vmatpush.bf16.msra.mxu1 %v1741_v37 }
  0xb0   : > { %745 = vmatpush.bf16.msra.mxu0 %v1725_v42  ;;  %770 = vmatpush.bf16.msra.mxu2 %v1769_v7 }
  0xb1   : > { %759 = vmatpush.bf16.msra.mxu1 %v1729_v43 }
  0xb4   : > { %746 = vmatpush.bf16.msra.mxu0 %v1713_v48  ;;  %771 = vmatpush.bf16.msra.mxu2 %v1757_v21 }
  0xb5   : > { %760 = vmatpush.bf16.msra.mxu1 %v1717_v51 }
  0xb7   : > { %747 = vmatmul.bf16.vlgmr.msra.gmra.mxu0 %v2656_v52 }
  0xb8   : > { %761 = vmatmul.bf16.vlgmr.msra.gmra.mxu1 %v2656_v52  ;;  %772 = vmatpush.bf16.msra.mxu2 %v1745_v23 }
  0xbc   : > { %773 = vmatpush.bf16.msra.mxu2 %v1733_v27 }
  0xc0   : > { %774 = vmatpush.bf16.msra.mxu2 %v1721_v29 }
  0xc3   : > { %775 = vmatmul.bf16.vlgmr.msra.gmra.mxu2 %v2656_v52 }
 0x134   : > { %v748_v1 = vpop.f32.mrf.mxu0 }
 0x135   : > { %v749_v4 = vadd.f32 %v748_v1, %v605_v62  ;;  %v762_v5 = vpop.f32.mrf.mxu1 }
 0x136   : > { %v763_v6 = vadd.f32 %v762_v5, %v606_v63 }
 0x138   : > { %v781_v8 = vpack.c.bf16 %v763_v6, %v749_v4 }
 0x13a   : > { %795 = vrot.lane.b32.xlu1 %v781_v8, %s2346_s15  ;;  %787 = vrot.lane.b32.xlu0 %v781_v8, %s2347_s28  ;;  %v799_v9 = vrot.slane %v781_v8, 4 }
 0x13c   : > { %v750_v10 = vpop.f32.mrf.mxu0  ;;  %v826_v11 = vsel %vm821_vm0, %v799_v9, 0 }
 0x13d   : > { %v751_v12 = vadd.f32 %v750_v10, %v605_v62  ;;  %v764_v13 = vpop.f32.mrf.mxu1  ;;  %835 = vmatpush.bf16.xpose.msrb.mxu0 %v826_v11 }
 0x13e   : > { %v765_v14 = vadd.f32 %v764_v13, %v606_v63 }
 0x140   : > { %v783_v15 = vpack.c.bf16 %v765_v14, %v751_v12 }
 0x142   : > { %793 = vrot.lane.b32.xlu2 %v783_v15, %s2348_s20  ;;  %789 = vrot.lane.b32.xlu1 %v783_v15, %s2347_s28  ;;  %v800_v16 = vrot.slane %v783_v15, 4 }
 0x143   : > { %791 = vrot.lane.b32.xlu0 %v781_v8, %s2348_s20 }
 0x144   : > { %1806 = vmatmul.msk.bf16.vlgmr.msrb.gmra.mxu0 %vm821_vm0, %v781_v8  ;;  %v902_v17 = vsel %vm821_vm0, %v800_v16, 0 }
 0x145   : > { %911 = vmatpush.bf16.xpose.msrb.mxu1 %v902_v17 }
 0x146   : > { %v776_v53 = vpop.f32.mrf.mxu2 }
 0x147   : > { %v777_v55 = vadd.f32 %v776_v53, %v607_v54 }
 0x149   : > { %v782_v56 = vpack.c.bf16 %v777_v55, %v777_v55 }
 0x14a   : > { %797 = vrot.lane.b32.xlu2 %v783_v15, %s2346_s15 }
 0x14b   : > { %v1075_v60 = vsel %vm1073_vm1, %v782_v56, 0 }
 0x14c   : > { %1810 = vmatmul.msk.bf16.vlgmr.msrb.gmra.mxu1 %vm821_vm0, %v783_v15 }
 0x14d   : > { %1084 = vmatpush.bf16.msra.mxu1 %v1075_v60 }
 0x14e   : > { %v778_v57 = vpop.f32.mrf.mxu2 }
 0x14f   : > { %v779_v59 = vadd.f32 %v778_v57, %v607_v54 }
 0x151   : > { %v2712_v62 = vpack.c.bf16 %v779_v59, %v779_v59 }
 0x153   : > { %v1151_v0 = vsel %vm1073_vm1, %v2712_v62, 0 }
 0x154   : > { %1160 = vmatpush.bf16.msrb.mxu1 %v1151_v0 }
 0x19c   : > { %v794_v30 = vpop.permute.xlu2 %793 }
 0x19d   : > { %v804_v41 = vrot.slane %v794_v30, 4 }
 0x19f   : > { %v940_v47 = vsel %vm821_vm0, %v804_v41, 0 }
 0x1a4   : > { %v798_v31 = vpop.permute.xlu2 %797 }
 0x1a5   : > { %v806_v32 = vrot.slane %v798_v31, 4 }
 0x1a7   : > { %v959_v39 = vsel %vm821_vm0, %v806_v32, 0 }
 0x1ac   : > { %v796_v33 = vpop.permute.xlu1 %795  ;;  %v788_v34 = vpop.permute.xlu0 %787 }
 0x1ad   : > { %v805_v35 = vrot.slane %v796_v33, 4  ;;  %v801_v36 = vrot.slane %v788_v34, 4 }
 0x1af   : > { %v845_v37 = vsel %vm821_vm0, %v801_v36, 0  ;;  %v883_v38 = vsel %vm821_vm0, %v805_v35, 0 }
 0x1b0   : > { %854 = vmatpush.bf16.xpose.msra.mxu3 %v845_v37  ;;  %892 = vmatpush.bf16.xpose.msra.mxu0 %v883_v38 }
 0x1b4   : > { %v790_v40 = vpop.permute.xlu1 %789 }
 0x1b5   : > { %v802_v42 = vrot.slane %v790_v40, 4  ;;  %v792_v43 = vpop.permute.xlu0 %791 }
 0x1b6   : > { %v803_v44 = vrot.slane %v792_v43, 4 }
 0x1b7   : > { %1807 = vmatmul.msk.bf16.vlgmr.msra.gmra.mxu3 %vm821_vm0, %v788_v34  ;;  %1809 = vmatmul.msk.bf16.vlgmr.msra.gmra.mxu0 %vm821_vm0, %v796_v33  ;;  %v921_v45 = vsel %vm821_vm0, %v802_v42, 0 }
 0x1b8   : > { %968 = vmatpush.bf16.xpose.msrb.mxu0 %v959_v39  ;;  %v864_v46 = vsel %vm821_vm0, %v803_v44, 0  ;;  %930 = vmatpush.bf16.xpose.msrb.mxu2 %v921_v45 }
 0x1b9   : > { %873 = vmatpush.bf16.xpose.msrb.mxu3 %v864_v46 }
 0x1bf   : > { %1811 = vmatmul.msk.bf16.vlgmr.msrb.gmra.mxu2 %vm821_vm0, %v790_v40 }
 0x1c1   : > { %949 = vmatpush.bf16.xpose.msra.mxu3 %v940_v47  ;;  %v2701_v48 = vpop.f32.mrf.mxu0 }
 0x1c2   : > { %v974_v49 = vsel %vm821_vm0, %v2701_v48, -inf }
 0x1c3   : > { %975 = vmax.xlane.f32.xlu2 %v974_v49 }
 0x1c7   : > { %1808 = vmatmul.msk.bf16.vlgmr.msrb.gmra.mxu3 %vm821_vm0, %v792_v43  ;;  %1813 = vmatmul.msk.bf16.vlgmr.msrb.gmra.mxu0 %vm821_vm0, %v798_v31 }
 0x1c9   : > { %v839_v50 = vpop.f32.mrf.mxu0  ;;  %v2707_v51 = vpop.f32.mrf.mxu1 }
 0x1ca   : > { %v986_v5 = vsel %vm821_vm0, %v2707_v51, -inf }
 0x1d1   : > { %v915_v52 = vpop.f32.mrf.mxu1 }
 0x1d7   : > { %1812 = vmatmul.msk.bf16.vlgmr.msra.gmra.mxu3 %vm821_vm0, %v794_v30 }
 0x234   : > { %v894_v61 = vpop.f32.mrf.mxu0 }
 0x235   : > { %v983_v63 = vsel %vm821_vm0, %v894_v61, -inf }
 0x236   : > { %984 = vmax.xlane.f32.xlu2 %v983_v63  ;;  %v976_v17 = vpop.xlane.xlu2 %975 }
 0x237   : > { %v998_v49 = vsub.f32 %v2701_v48, %v976_v17 }
 0x239   : > { %v1006_v52 = vmul.f32 1.442695, %v998_v49 }
 0x23a   : > { %v856_v1 = vpop.f32.mrf.mxu3 }
 0x23b   : > { %v977_v58 = vsel %vm821_vm0, %v856_v1, -inf }
 0x23c   : > { %978 = vmax.xlane.f32.xlu0 %v977_v58  ;;  %v896_v2 = vpop.f32.mrf.mxu0 }
 0x242   : > { %v858_v3 = vpop.f32.mrf.mxu3  ;;  %v932_v4 = vpop.f32.mrf.mxu2 }
 0x243   : > { %v989_v6 = vsel %vm821_vm0, %v932_v4, -inf }
 0x244   : > { %987 = vmax.xlane.f32.xlu0 %v986_v5  ;;  %990 = vmax.xlane.f32.xlu2 %v989_v6  ;;  %v970_v7 = vpop.f32.mrf.mxu0 }
 0x245   : > { %v995_v8 = vsel %vm821_vm0, %v970_v7, -inf }
 0x246   : > { %996 = vmax.xlane.f32.xlu1 %v995_v8 }
 0x24a   : > { %v875_v9 = vpop.f32.mrf.mxu3  ;;  %v934_v10 = vpop.f32.mrf.mxu2 }
 0x24b   : > { %v980_v12 = vsel %vm821_vm0, %v875_v9, -inf }
 0x24c   : > { %v972_v11 = vpop.f32.mrf.mxu0 }
 0x24e   : > { %981 = vmax.xlane.f32.xlu1 %v980_v12 }
 0x252   : > { %v877_v13 = vpop.f32.mrf.mxu3 }
 0x258   : > { %817 = vrot.lane.b32.xlu0 %v782_v56, %s2346_s15 }
 0x25a   : > { %v951_v14 = vpop.f32.mrf.mxu3 }
 0x25b   : > { %v992_v16 = vsel %vm821_vm0, %v951_v14, -inf }
 0x25c   : > { %809 = vrot.lane.b32.xlu2 %v782_v56, %s2347_s28 }
 0x262   : > { %v953_v15 = vpop.f32.mrf.mxu3 }
 0x267   : > { %813 = vrot.lane.b32.xlu1 %v782_v56, %s2348_s20 }
 0x282   : > { %993 = vmax.xlane.f32.xlu0 %v992_v16 }
 0x2a9   : > { %v985_v18 = vpop.xlane.xlu2 %984 }
 0x2aa   : > { %v1001_v19 = vsub.f32 %v894_v61, %v985_v18 }
 0x2ac   : > { %v1012_v20 = vmul.f32 1.442695, %v1001_v19 }
 0x2ae   : > { %2043 = vpow2.f32 %v1012_v20 }
 0x2af   : > { %v979_v21 = vpop.xlane.xlu0 %978 }
 0x2b0   : > { %v999_v22 = vsub.f32 %v856_v1, %v979_v21 }
 0x2b2   : > { %v1008_v23 = vmul.f32 1.442695, %v999_v22 }
 0x2b4   : > { %v2727_v24 = vpop.eup %2043  ;;  %2045 = vpow2.f32 %v1008_v23 }
 0x2b5   : > { %v1031_v25 = vsel %vm821_vm0, %v2727_v24, 0.0 }
 0x2b6   : > { %1032 = vadd.xlane.f32.xlu0 %v1031_v25 }
 0x2b7   : > { %v991_v26 = vpop.xlane.xlu2 %990  ;;  %v988_v35 = vpop.xlane.xlu0 %987 }
 0x2b8   : > { %v1003_v27 = vsub.f32 %v932_v4, %v991_v26  ;;  %v1002_v50 = vsub.f32 %v2707_v51, %v988_v35 }
 0x2b9   : > { %v997_v28 = vpop.xlane.xlu1 %996 }
 0x2ba   : > { %v2731_v29 = vpop.eup %2045  ;;  %v1016_v30 = vmul.f32 1.442695, %v1003_v27  ;;  %v1005_v46 = vsub.f32 %v970_v7, %v997_v28  ;;  %v1014_v56 = vmul.f32 1.442695, %v1002_v50 }
 0x2bb   : > { %v1025_v31 = vsel %vm821_vm0, %v2731_v29, 0.0 }
 0x2bc   : > { %2047 = vpow2.f32 %v1016_v30  ;;  %v1020_v47 = vmul.f32 1.442695, %v1005_v46 }
 0x2be   : > { %1026 = vadd.xlane.f32.xlu0 %v1025_v31 }
 0x2bf   : > { %v810_v32 = vpop.permute.xlu2 %809 }
 0x2c0   : > { %v1094_v33 = vsel %vm1073_vm1, %v810_v32, 0 }
 0x2c1   : > { %1103 = vmatpush.bf16.msra.mxu2 %v1094_v33  ;;  %v982_v34 = vpop.xlane.xlu1 %981 }
 0x2c2   : > { %v1000_v36 = vsub.f32 %v875_v9, %v982_v34  ;;  %v2736_v37 = vpop.eup %2047 }
 0x2c3   : > { %v1037_v39 = vsel %vm821_vm0, %v2736_v37, 0.0 }
 0x2c4   : > { %v1010_v38 = vmul.f32 1.442695, %v1000_v36  ;;  %1038 = vadd.xlane.f32.xlu2 %v1037_v39 }
 0x2c6   : > { %2049 = vpow2.f32 %v1010_v38 }
 0x2c7   : > { %2051 = vpow2.f32 %v1020_v47 }
 0x2c8   : > { %2053 = vpow2.f32 %v1006_v52 }
 0x2ca   : > { %v818_v40 = vpop.permute.xlu0 %817 }
 0x2cb   : > { %v1132_v41 = vsel %vm1073_vm1, %v818_v40, 0 }
 0x2cc   : > { %v2050_v42 = vpop.eup %2049  ;;  %1141 = vmatpush.bf16.msra.mxu0 %v1132_v41 }
 0x2cd   : > { %v1028_v43 = vsel %vm821_vm0, %v2050_v42, 0.0  ;;  %v2749_v55 = vpop.eup %2051 }
 0x2ce   : > { %1029 = vadd.xlane.f32.xlu1 %v1028_v43  ;;  %v1043_v59 = vsel %vm821_vm0, %v2749_v55, 0.0  ;;  %v2054_v60 = vpop.eup %2053 }
 0x2cf   : > { %v1022_v51 = vsel %vm821_vm0, %v2054_v60, 0.0 }
 0x2d2   : > { %811 = vrot.lane.b32.xlu0 %v2712_v62, %s2347_s28 }
 0x2d9   : > { %v814_v44 = vpop.permute.xlu1 %813 }
 0x2da   : > { %v1113_v45 = vsel %vm1073_vm1, %v814_v44, 0 }
 0x2db   : > { %1122 = vmatpush.bf16.msrb.mxu3 %v1113_v45 }
 0x2dc   : > { %815 = vrot.lane.b32.xlu2 %v2712_v62, %s2348_s20 }
 0x2f5   : > { %v994_v53 = vpop.xlane.xlu0 %993 }
 0x2f6   : > { %v1004_v54 = vsub.f32 %v951_v14, %v994_v53 }
 0x2f8   : > { %v1018_v57 = vmul.f32 1.442695, %v1004_v54 }
 0x2fa   : > { %2055 = vpow2.f32 %v1018_v57 }
 0x2fb   : > { %2057 = vpow2.f32 %v1014_v56 }
 0x2fc   : > { %1044 = vadd.xlane.f32.xlu0 %v1043_v59 }
 0x300   : > { %v2056_v61 = vpop.eup %2055 }
 0x301   : > { %v1040_v48 = vsel %vm821_vm0, %v2056_v61, 0.0  ;;  %v2058_v63 = vpop.eup %2057 }
 0x302   : > { %1041 = vadd.xlane.f32.xlu1 %v1040_v48  ;;  %v1034_v0 = vsel %vm821_vm0, %v2058_v63, 0.0 }
 0x304   : > { %1023 = vadd.xlane.f32.xlu0 %v1022_v51 }
 0x305   : > { %1035 = vadd.xlane.f32.xlu2 %v1034_v0 }
 0x31b   : > { %819 = vrot.lane.b32.xlu1 %v2712_v62, %s2346_s15 }
 0x329   : > { %v1033_v1 = vpop.xlane.xlu0 %1032 }
 0x32a   : > { %2059 = vrcp.f32 %v1033_v1 }
 0x330   : > { %v2060_v58 = vpop.eup %2059 }
 0x331   : > { %v1057_v2 = vmul.f32 %v2060_v58, %v2727_v24  ;;  %v1027_v3 = vpop.xlane.xlu0 %1026 }
 0x332   : > { %2061 = vrcp.f32 %v1027_v3 }
 0x333   : > { %v1065_v4 = vpack.c.bf16 %v1057_v2, %v1057_v2 }
 0x335   : > { %1817 = vmatmul.msk.bf16.vlgmr.msra.gmra.mxu0 %vm821_vm0, %v1065_v4 }
 0x337   : > { %v1039_v6 = vpop.xlane.xlu2 %1038 }
 0x338   : > { %v2062_v5 = vpop.eup %2061  ;;  %2063 = vrcp.f32 %v1039_v6 }
 0x339   : > { %v1055_v7 = vmul.f32 %v2062_v5, %v2731_v29 }
 0x33b   : > { %v1063_v8 = vpack.c.bf16 %v1055_v7, %v1055_v7 }
 0x33d   : > { %1815 = vmatmul.msk.bf16.vlgmr.msra.gmra.mxu2 %vm821_vm0, %v1063_v8  ;;  %v1927_v8 = vld [vmem:[%s2592_s19 + $0x8] sm:$0xff] }
 0x33e   : > { %v2064_v11 = vpop.eup %2063 }
 0x33f   : > { %v816_v9 = vpop.permute.xlu2 %815  ;;  %v1059_v14 = vmul.f32 %v2064_v11, %v2736_v37 }
 0x340   : > { %v1189_v62 = vsel %vm1073_vm1, %v816_v9, 0  ;;  %v1926_v9 = vld [vmem:[%s2592_s19] sm:$0xff] }
 0x341   : > { %v1030_v10 = vpop.xlane.xlu1 %1029  ;;  %1198 = vmatpush.bf16.msra.mxu3 %v1189_v62  ;;  %v1067_v17 = vpack.c.bf16 %v1059_v14, %v1059_v14  ;;  %v1935_v62 = vld [vmem:[%s2598_s8 + $0x38] sm:$0xff] }
 0x342   : > { %2065 = vrcp.f32 %v1030_v10  ;;  %v1934_v10 = vld [vmem:[%s2598_s8 + $0x30] sm:$0xff] }
 0x344   : > { %v812_v12 = vpop.permute.xlu0 %811 }
 0x345   : > { %v1170_v13 = vsel %vm1073_vm1, %v812_v12, 0  ;;  %v1933_v12 = vld [vmem:[%s2598_s8 + $0x28] sm:$0xff] }
 0x346   : > { %1179 = vmatpush.bf16.msrb.mxu2 %v1170_v13  ;;  %v1932_v13 = vld [vmem:[%s2598_s8 + $0x20] sm:$0xff] }
 0x348   : > { %v2066_v15 = vpop.eup %2065 }
 0x349   : > { %v1056_v16 = vmul.f32 %v2066_v15, %v2050_v42  ;;  %v1931_v15 = vld [vmem:[%s2598_s8 + $0x18] sm:$0xff] }
 0x34a   : > { %1387 = vmatpush.bf16.msra.mxu2 %v1935_v62 }
 0x34b   : > { %v1064_v18 = vpack.c.bf16 %v1056_v16, %v1056_v16 }
 0x34d   : > { %1816 = vmatmul.msk.bf16.vlgmr.msrb.gmra.mxu3 %vm821_vm0, %v1064_v18  ;;  %1819 = vmatmul.msk.bf16.vlgmr.msrb.gmra.mxu2 %vm821_vm0, %v1067_v17 }
 0x34e   : > { %1388 = vmatpush.bf16.msra.mxu2 %v1934_v10 }
 0x352   : > { %1389 = vmatpush.bf16.msra.mxu2 %v1933_v12 }
 0x356   : > { %1390 = vmatpush.bf16.msra.mxu2 %v1932_v13 }
 0x35a   : > { %1391 = vmatpush.bf16.msra.mxu2 %v1931_v15 }
 0x36f   : > { %v1045_v19 = vpop.xlane.xlu0 %1044 }
 0x375   : > { %v1042_v20 = vpop.xlane.xlu1 %1041 }
 0x376   : > { %2067 = vrcp.f32 %v1042_v20 }
 0x377   : > { %v1024_v21 = vpop.xlane.xlu0 %1023 }
 0x378   : > { %2069 = vrcp.f32 %v1024_v21  ;;  %v1036_v28 = vpop.xlane.xlu2 %1035 }
 0x379   : > { %2071 = vrcp.f32 %v1045_v19 }
 0x37a   : > { %2073 = vrcp.f32 %v1036_v28 }
 0x37c   : > { %v2068_v22 = vpop.eup %2067 }
 0x37d   : > { %v1060_v23 = vmul.f32 %v2068_v22, %v2056_v61 }
 0x37e   : > { %v2070_v24 = vpop.eup %2069 }
 0x37f   : > { %v1068_v25 = vpack.c.bf16 %v1060_v23, %v1060_v23  ;;  %v1054_v26 = vmul.f32 %v2070_v24, %v2054_v60  ;;  %v2072_v29 = vpop.eup %2071 }
 0x380   : > { %v2074_v30 = vpop.eup %2073  ;;  %v1061_v31 = vmul.f32 %v2072_v29, %v2749_v55 }
 0x381   : > { %v1062_v27 = vpack.c.bf16 %v1054_v26, %v1054_v26  ;;  %1820 = vmatmul.msk.bf16.vlgmr.msra.gmra.mxu3 %vm821_vm0, %v1068_v25  ;;  %v1058_v32 = vmul.f32 %v2074_v30, %v2058_v63  ;;  %v1930_v30 = vld [vmem:[%s2598_s8 + $0x10] sm:$0xff] }
 0x382   : > { %v1069_v35 = vpack.c.bf16 %v1061_v31, %v1061_v31  ;;  %1392 = vmatpush.bf16.msra.mxu2 %v1930_v30  ;;  %v1929_v31 = vld [vmem:[%s2598_s8 + $0x8] sm:$0xff] }
 0x383   : > { %1814 = vmatmul.msk.bf16.vlgmr.msra.gmra.mxu1 %vm821_vm0, %v1062_v27  ;;  %v1066_v36 = vpack.c.bf16 %v1058_v32, %v1058_v32  ;;  %v1928_v32 = vld [vmem:[%s2598_s8] sm:$0xff] }
 0x384   : > { %1310 = vmatpush.bf16.msra.mxu1 %v1927_v8  ;;  %v2042_v8 = vld [vmem:[%s558_s18] ss:$0 sm:$0xff] }
 0x386   : > { %1393 = vmatpush.bf16.msra.mxu2 %v1929_v31 }
 0x388   : > { %1311 = vmatpush.bf16.msra.mxu1 %v1926_v9 }
 0x38a   : > { %1394 = vmatpush.bf16.msra.mxu2 %v1928_v32 }
 0x38d   : > { %v820_v33 = vpop.permute.xlu1 %819 }
 0x38e   : > { %v1208_v34 = vsel %vm1073_vm1, %v820_v33, 0 }
 0x38f   : > { %1217 = vmatpush.bf16.msrb.mxu0 %v1208_v34  ;;  %v2040_v34 = vld [vmem:[%s552_s0] ss:$0 sm:$0xff] }
 0x392   : > { %1821 = vmatmul.msk.bf16.vlgmr.msrb.gmra.mxu0 %vm821_vm0, %v1069_v35 }
 0x393   : > { %1818 = vmatmul.msk.bf16.vlgmr.msrb.gmra.mxu1 %vm821_vm0, %v1066_v36 }
 0x3b2   : > { %v1143_v37 = vpop.f32.mrf.mxu0 }
 0x3b3   : > { %v1226_v4 = vpack.c.bf16 %v1143_v37, %v1143_v37 }
 0x3b5   : > { %v1242_v6 = vunpack.c.l.b16 %v1226_v4 }
 0x3b7   : > { %v1243_v7 = vpack.c.b16 %v1242_v6, %v1242_v6 }
 0x3ba   : > { %v1145_v38 = vpop.f32.mrf.mxu0 }
 0x3c0   : > { %v1105_v39 = vpop.f32.mrf.mxu2 }
 0x3c1   : > { %v1224_v40 = vpack.c.bf16 %v1105_v39, %v1105_v39  ;;  %v1943_v39 = vld [vmem:[%s2600_s26 + $0x38] sm:$0xff] }
 0x3c2   : > { %1488 = vmatpush.bf16.msrb.mxu3 %v1943_v39 }
 0x3c3   : > { %v1232_v41 = vunpack.c.l.b16 %v1224_v40  ;;  %v1942_v40 = vld [vmem:[%s2600_s26 + $0x30] sm:$0xff] }
 0x3c5   : > { %v1233_v42 = vpack.c.b16 %v1232_v41, %v1232_v41  ;;  %v1941_v41 = vld [vmem:[%s2600_s26 + $0x28] sm:$0xff] }
 0x3c6   : > { %1489 = vmatpush.bf16.msrb.mxu3 %v1942_v40 }
 0x3c7   : > { %1234 = vrot.lane.b32.xlu1 %v1233_v42, %s2349_s14  ;;  %v1940_v42 = vld [vmem:[%s2600_s26 + $0x20] sm:$0xff] }
 0x3c8   : > { %v1107_v43 = vpop.f32.mrf.mxu2 }
 0x3c9   : > { %v1939_v43 = vld [vmem:[%s2600_s26 + $0x18] sm:$0xff] }
 0x3ca   : > { %1490 = vmatpush.bf16.msrb.mxu3 %v1941_v41 }
 0x3ce   : > { %1491 = vmatpush.bf16.msrb.mxu3 %v1940_v42 }
 0x3d0   : > { %v1124_v44 = vpop.f32.mrf.mxu3  ;;  %v1181_v45 = vpop.f32.mrf.mxu2 }
 0x3d1   : > { %v1225_v55 = vpack.c.bf16 %v1124_v44, %v1124_v44  ;;  %v1228_v0 = vpack.c.bf16 %v1181_v45, %v1181_v45  ;;  %v1938_v44 = vld [vmem:[%s2600_s26 + $0x10] sm:$0xff]  ;;  %v1937_v45 = vld [vmem:[%s2600_s26 + $0x8] sm:$0xff] }
 0x3d2   : > { %1492 = vmatpush.bf16.msrb.mxu3 %v1939_v43 }
 0x3d3   : > { %v1237_v59 = vunpack.c.l.b16 %v1225_v55  ;;  %v1256_v2 = vunpack.c.l.b16 %v1228_v0 }
 0x3d5   : > { %v1238_v63 = vpack.c.b16 %v1237_v59, %v1237_v59  ;;  %v1257_v5 = vpack.c.b16 %v1256_v2, %v1256_v2 }
 0x3d6   : > { %1493 = vmatpush.bf16.msrb.mxu3 %v1938_v44 }
 0x3d8   : > { %v1126_v46 = vpop.f32.mrf.mxu3  ;;  %v1183_v47 = vpop.f32.mrf.mxu2 }
 0x3d9   : > { %v2041_v46 = vld [vmem:[%s555_s16] ss:$0 sm:$0xff]  ;;  %s1511_s16 = sshll.u32 %s2868_s1, 4  ;;  %s1512_s16 = int_to_ptr.hbm [resolvable:$true] %s1511_s16 }
 0x3da   : > { %1494 = vmatpush.bf16.msrb.mxu3 %v1937_v45 }
 0x400   : > { %v1086_v49 = vpop.f32.mrf.mxu1 }
 0x401   : > { %v1223_v21 = vpack.c.bf16 %v1086_v49, %v1086_v49  ;;  %v1936_v49 = vld [vmem:[%s2600_s26] sm:$0xff] }
 0x402   : > { %1495 = vmatpush.bf16.msrb.mxu3 %v1936_v49 }
 0x404   : > { %v1200_v50 = vpop.f32.mrf.mxu3 }
 0x405   : > { %v1229_v52 = vpack.c.bf16 %v1200_v50, %v1200_v50 }
 0x407   : > { %v1261_v53 = vunpack.c.l.b16 %v1229_v52 }
 0x408   : > { %v1088_v54 = vpop.f32.mrf.mxu1 }
 0x409   : > { %v1262_v56 = vpack.c.b16 %v1261_v53, %v1261_v53 }
 0x40b   : > { %1263 = vrot.lane.b32.xlu0 %v1262_v56, %s2350_s21 }
 0x40c   : > { %v1202_v57 = vpop.f32.mrf.mxu3 }
 0x40f   : > { %v1219_v60 = vpop.f32.mrf.mxu0 }
 0x410   : > { %v1230_v61 = vpack.c.bf16 %v1219_v60, %v1219_v60  ;;  %v1162_v48 = vpop.f32.mrf.mxu1 }
 0x411   : > { %v1227_v17 = vpack.c.bf16 %v1162_v48, %v1162_v48 }
 0x412   : > { %v1266_v51 = vunpack.c.l.b16 %v1230_v61 }
 0x413   : > { %1239 = vrot.lane.b32.xlu0 %v1238_v63, %s2350_s21 }
 0x414   : > { %v1267_v1 = vpack.c.b16 %v1266_v51, %v1266_v51 }
 0x416   : > { %1268 = vrot.lane.b32.xlu1 %v1267_v1, %s2351_s22 }
 0x417   : > { %v1221_v58 = vpop.f32.mrf.mxu0 }
 0x418   : > { %v1164_v3 = vpop.f32.mrf.mxu1 }
 0x41e   : > { %1258 = vrot.lane.b32.xlu1 %v1257_v5, %s2349_s14 }
 0x426   : > { %1244 = vrot.lane.b32.xlu1 %v1243_v7, %s2351_s22 }
 0x439   : > { %v1235_v11 = vpop.permute.xlu1 %1234 }
 0x43a   : > { %v1248_v24 = vsel %vm821_vm0, %v1223_v21, %v1235_v11 }
 0x47d   : > { %v1264_v16 = vpop.permute.xlu0 %1263 }
 0x485   : > { %v1240_v22 = vpop.permute.xlu0 %1239 }
 0x486   : > { %v1251_v25 = vsel %vm1249_vm2, %v1248_v24, %v1240_v22 }
 0x488   : > { %v1269_v14 = vpop.permute.xlu1 %1268 }
 0x490   : > { %v1259_v18 = vpop.permute.xlu1 %1258 }
 0x491   : > { %v1272_v19 = vsel %vm821_vm0, %v1227_v17, %v1259_v18 }
 0x492   : > { %v1274_v20 = vsel %vm1249_vm2, %v1272_v19, %v1264_v16 }
 0x493   : > { %v1276_v23 = vsel %vm1252_vm3, %v1274_v20, %v1269_v14 }
 0x494   : > { %v1278_v26 = vrot.slane %v1276_v23, 4 }
 0x498   : > { %v1245_v27 = vpop.permute.xlu1 %1244 }
 0x499   : > { %v1254_v28 = vsel %vm1252_vm3, %v1251_v25, %v1245_v27 }
 0x49a   : > { %v1280_v29 = vsel %vm1073_vm1, %v1254_v28, %v1278_v26 }
 0x49b   : > { %1830 = vmatmul.msk.bf16.vlgmr.msra.gmra.mxu1 %vm1301_vm4, %v1280_v29 }
 0x518   : > { %v1313_v33 = vpop.f32.mrf.mxu1 }
 0x519   : > { %v1314_v36 = vadd.f32 %v2040_v34, %v1313_v33 }
 0x520   : > { %v1315_v35 = vpop.f32.mrf.mxu1 }
 0x521   : > { %v1316_v37 = vadd.f32 %v2040_v34, %v1315_v35 }
 0x523   : > { %v1318_v38 = vpack.c.bf16 %v1316_v37, %v1314_v36 }
 0x525   : > { %1395 = vmatmul.bf16.vlgmr.msra.gmra.mxu2 %v1318_v38 }
 0x5a8   : > { %v1396_v47 = vpop.f32.mrf.mxu2 }
 0x5a9   : > { %v1397_v50 = vadd.f32 %v2041_v46, %v1396_v47 }
 0x5ab   : > { %v1401_v52 = vmul.f32 %v1397_v50, %v1397_v50 }
 0x5ad   : > { %v1403_v53 = vmul.f32 %v1401_v52, %v1397_v50 }
 0x5af   : > { %v1405_v54 = vmul.f32 0.044715, %v1403_v53 }
 0x5b0   : > { %v1398_v55 = vpop.f32.mrf.mxu2 }
 0x5b1   : > { %v1407_v56 = vadd.f32 %v1405_v54, %v1397_v50  ;;  %v1399_v57 = vadd.f32 %v2041_v46, %v1398_v55 }
 0x5b3   : > { %v1409_v59 = vmul.f32 0.7978846, %v1407_v56  ;;  %v1402_v60 = vmul.f32 %v1399_v57, %v1399_v57 }
 0x5b5   : > { %v1404_v61 = vmul.f32 %v1402_v60, %v1399_v57  ;;  %2075 = vtanh.f32 %v1409_v59 }
 0x5b7   : > { %v1406_v48 = vmul.f32 0.044715, %v1404_v61 }
 0x5b9   : > { %v1408_v63 = vadd.f32 %v1406_v48, %v1399_v57 }
 0x5bb   : > { %v1410_v51 = vmul.f32 0.7978846, %v1408_v63  ;;  %v2076_v0 = vpop.eup %2075 }
 0x5bc   : > { %v1413_v1 = vadd.f32 1.0, %v2076_v0 }
 0x5bd   : > { %2077 = vtanh.f32 %v1410_v51 }
 0x5be   : > { %v1415_v2 = vmul.f32 0.5, %v1413_v1 }
 0x5c0   : > { %v1417_v5 = vmul.f32 %v1415_v2, %v1397_v50 }
 0x5c3   : > { %v2078_v58 = vpop.eup %2077 }
 0x5c4   : > { %v1414_v3 = vadd.f32 1.0, %v2078_v58 }
 0x5c6   : > { %v1416_v4 = vmul.f32 0.5, %v1414_v3 }
 0x5c8   : > { %v1418_v6 = vmul.f32 %v1416_v4, %v1399_v57 }
 0x5ca   : > { %v1419_v7 = vpack.c.bf16 %v1418_v6, %v1417_v5 }
 0x5cc   : > { %1496 = vmatmul.bf16.vlgmr.msrb.gmra.mxu3 %v1419_v7 }
 0x64f   : > { %v1497_v9 = vpop.f32.mrf.mxu3 }
 0x650   : > { %v1498_v62 = vadd.f32 %v2042_v8, %v1497_v9 }
 0x652   : > { %1502 = vst [vmem:[#allocation13] sm:$0xff] %v1498_v62 }
 0x657   : > { %v1499_v10 = vpop.f32.mrf.mxu3 }
 0x658   : > { %v1500_v11 = vadd.f32 %v2042_v8, %v1499_v10 }
 0x65a   : > { %1503 = vst [vmem:[#allocation13 + $0x8] sm:$0xff] %v1500_v11 }
 0x65b   : > { %1965 = dma.vmem_to_hbm [thread:$0]  (%p1991_p7), %s1510_s30, 256, %s1512_s16, [#allocation4], %s2353_s27, %s2353_s27, %s2349_s14  }
 0x65c   : > { %2320 = dma.done.wait (%p1991_p7), [#allocation4], 256  }
 0x65d   : > { %2322 = vsyncadd (%p1991_p7), [#allocation4], 4294967040 }
 0x65e PF: > { %s2869_s12 = sld [smem:[#allocation20_spill]]  ;;  %s2872_s30 = smov %s2329_s10 }
 0x65f   : > { %s2870_s3 = sld [smem:[#allocation19_spill]] }
 0x660   : > { %s2871_s11 = sld [smem:[#allocation21_spill]] }
 0x664   : > { %p27_p10 = scmp.ge.s32.totalorder %s2869_s12, 4  }
 0x665   : > { %s2873_s10 = smov %s2870_s3 }
 0x666   :  { %29 = sbr.rel (!%p27_p10) target bundleno = 15 (0xf), region = 159 }
 0x66b   :  { %1528 = vsyncpa [#allocation3], 1 }
 0x66c   :  { %1530 = vsyncpa [#allocation3 + $0x1], 1 }
 0x66d   :  { %1531 = vsyncpa [#allocation6], 1 }
 0x66e   :  { %1533 = vsyncpa [#allocation6 + $0x1], 1 }
 0x66f   :  { %1534 = vsyncpa [#allocation9], 1 }
 0x670   :  { %1536 = vsyncpa [#allocation9 + $0x1], 1 }
 0x671   :  { %1537 = vsyncpa [#allocation12], 1 }
 0x672   :  { %1539 = vsyncpa [#allocation12 + $0x1], 1 }
 0x673   :  { %1540 = vsyncpa [#allocation4], 1 }
 0x674   :  { %1542 = vsyncpa [#allocation4 + $0x1], 1 }

</bundles_post_ra>
